<compile_context>
chip_gen: v6e
topology: v6e:2x2x1
jax: 0.10.0
libtpu: 0.0.40
codegen_flags: <defaults>
</compile_context>

<pallas_src>
import jax
import jax.numpy as jnp
from jax.experimental import pallas as pl
from jax.experimental.pallas import tpu as pltpu


def linear_kernel(x_ref, w_ref, b_ref, o_ref):
    # x_ref: (tm, K) activation tile (f32 or bf16)
    # w_ref: (K, N) bf16 weight, VMEM-resident (constant index_map)
    # b_ref: (1, N) f32 bias, VMEM-resident
    # y = x @ w + b with bf16 MXU inputs and f32 accumulation.
    x = x_ref[...].astype(jnp.bfloat16)            # VPU cast, hidden under DMA
    y = jnp.dot(x, w_ref[...], preferred_element_type=jnp.float32)
    o_ref[...] = (y + b_ref[...]).astype(o_ref.dtype)


def init_linear_params(weight, bias):
    """One-time parameter prep (the analogue of nn.Linear's stored parameters).

    weight: [out, H] torch layout (f32)  ->  [H, out] bf16 (MXU-native RHS)
    bias:   [out]                        ->  [1, out] f32
    """
    w_t_bf16 = jnp.asarray(weight).T.astype(jnp.bfloat16)   # [K, N], cast once
    b2d = jnp.asarray(bias, dtype=jnp.float32).reshape(1, -1)
    return w_t_bf16, b2d


def linear_pallas(x2d, w_t_bf16, b2d, *, tm=192):
    """x2d: [M, K], w_t_bf16: [K, N] bf16, b2d: [1, N] f32 -> [M, N] (x2d dtype)."""
    M, K = x2d.shape
    K2, N = w_t_bf16.shape
    assert K == K2

    n_tiles = pl.cdiv(M, tm)   # partial last block handled by Pallas; no jnp.pad

    cost = pl.CostEstimate(
        flops=2 * M * K * N,
        transcendentals=0,
        bytes_accessed=(
            M * K * jnp.dtype(x2d.dtype).itemsize     # activations
            + K * N * 2                               # bf16 weight
            + N * 4                                   # f32 bias
            + M * N * jnp.dtype(x2d.dtype).itemsize   # output
        ),
    )

    return pl.pallas_call(
        linear_kernel,
        out_shape=jax.ShapeDtypeStruct((M, N), x2d.dtype),
        grid_spec=pltpu.PrefetchScalarGridSpec(
            num_scalar_prefetch=0,
            grid=(n_tiles,),
            in_specs=[
                pl.BlockSpec((tm, K), lambda i: (i, 0)),  # per-step activation tile
                pl.BlockSpec((K, N), lambda i: (0, 0)),   # weight: resident, DMA'd once
                pl.BlockSpec((1, N), lambda i: (0, 0)),   # bias: resident, DMA'd once
            ],
            out_specs=pl.BlockSpec((tm, N), lambda i: (i, 0)),
        ),
        compiler_params=pltpu.CompilerParams(
            dimension_semantics=("parallel",),            # 2-way TC split on v7x
        ),
        cost_estimate=cost,
    )(x2d, w_t_bf16, b2d)


def forward(x, w_t_bf16, b2d):
    """x: [B, S, H]  ->  [B, S, out]   (matches torch.nn.Linear: x @ weight.T + bias)."""
    B, S, H = x.shape
    N = w_t_bf16.shape[1]
    y2d = linear_pallas(x.reshape(B * S, H), w_t_bf16, b2d)
    return y2d.reshape(B, S, N)


if __name__ == "__main__":
    key = jax.random.PRNGKey(0)
    kx, kw, kb = jax.random.split(key, 3)

    # Shapes from the module spec: x277 = [1, 384, 1024], Linear(1024 -> 256)
    B, S, H, OUT = 1, 384, 1024, 256

    x = jax.random.normal(kx, (B, S, H), dtype=jnp.float32)
    # deterministic parameter init (uniform like nn.Linear default, scaled by 1/sqrt(H))
    bound = 1.0 / (H ** 0.5)
    weight = jax.random.uniform(kw, (OUT, H), minval=-bound, maxval=bound, dtype=jnp.float32)
    bias = jax.random.uniform(kb, (OUT,), minval=-bound, maxval=bound, dtype=jnp.float32)

    # One-time param prep (transpose + bf16 cast), then run the kernel.
    w_t_bf16, b2d = init_linear_params(weight, bias)
    y = forward(x, w_t_bf16, b2d)
    y = jax.block_until_ready(y)

    # correctness check against plain JAX reference (bf16-input / f32-accumulate
    # matmul over K=1024 -> tolerance loosened vs. a pure-f32 path)
    y_ref = x @ weight.T + bias
    assert y.shape == (B, S, OUT)
    assert y.dtype == x.dtype
    assert jnp.allclose(y, y_ref, atol=2e-2, rtol=2e-2)

    print("KERNEL_OK")
</pallas_src>

<mosaic_0001>
module attributes {stable_mosaic.version = 11 : i64} {
  func.func @linear_kernel(%arg0: i32, %arg1: memref<192x1024xf32, #tpu.memory_space<vmem>>, %arg2: memref<1024x256xbf16, #tpu.memory_space<vmem>>, %arg3: memref<1x256xf32, #tpu.memory_space<vmem>>, %arg4: memref<192x256xf32, #tpu.memory_space<vmem>>) attributes {dimension_semantics = [#tpu.dimension_semantics<parallel>], iteration_bounds = array<i64: 2>, scalar_prefetch = 0 : i64, scratch_operands = 0 : i64, tpu.core_type = #tpu.core_type<tc>, window_params = [{transform_indices = @transform_0, window_bounds = array<i64: 192, 1024>}, {pipeline_mode = #tpu.pipeline_mode<synchronous>, transform_indices = @transform_1, window_bounds = array<i64: 1024, 256>}, {pipeline_mode = #tpu.pipeline_mode<synchronous>, transform_indices = @transform_2, window_bounds = array<i64: 1, 256>}, {transform_indices = @transform_3, window_bounds = array<i64: 192, 256>}]} {
    %c0 = arith.constant 0 : index
    %c0_0 = arith.constant 0 : index
    %0 = vector.load %arg1[%c0, %c0_0] : memref<192x1024xf32, #tpu.memory_space<vmem>>, vector<192x1024xf32>
    %1 = arith.truncf %0 : vector<192x1024xf32> to vector<192x1024xbf16>
    %c0_1 = arith.constant 0 : index
    %c0_2 = arith.constant 0 : index
    %2 = vector.load %arg2[%c0_1, %c0_2] : memref<1024x256xbf16, #tpu.memory_space<vmem>>, vector<1024x256xbf16>
    %cst = arith.constant dense<0.000000e+00> : vector<192x256xf32>
    %3 = tpu.matmul %1, %2, %cst {dimension_numbers = #tpu.dot_dimension_numbers<[1], [0], [0], [1], [0, 0, 1, 1], [], []>} : vector<192x1024xbf16>, vector<1024x256xbf16>, vector<192x256xf32> -> vector<192x256xf32>
    %c0_3 = arith.constant 0 : index
    %c0_4 = arith.constant 0 : index
    %4 = vector.load %arg3[%c0_3, %c0_4] : memref<1x256xf32, #tpu.memory_space<vmem>>, vector<1x256xf32>
    %5 = vector.broadcast %4 : vector<1x256xf32> to vector<192x256xf32>
    %6 = arith.addf %3, %5 : vector<192x256xf32>
    %c0_5 = arith.constant 0 : index
    %c0_6 = arith.constant 0 : index
    %7 = vector.load %arg4[%c0_5, %c0_6] : memref<192x256xf32, #tpu.memory_space<vmem>>, vector<192x256xf32>
    tpu.vector_store %arg4[%c0_5, %c0_6], %6 {strides = array<i32>} : memref<192x256xf32, #tpu.memory_space<vmem>>, vector<192x256xf32>,
    return
  }
  func.func @transform_0(%arg0: i32) -> (i32, i32) {
    %c0_i32 = arith.constant 0 : i32
    %c0_i32_0 = arith.constant 0 : i32
    return %arg0, %c0_i32 : i32, i32
  }
  func.func @transform_1(%arg0: i32) -> (i32, i32) {
    %c0_i32 = arith.constant 0 : i32
    %c0_i32_0 = arith.constant 0 : i32
    %c0_i32_1 = arith.constant 0 : i32
    return %c0_i32, %c0_i32_0 : i32, i32
  }
  func.func @transform_2(%arg0: i32) -> (i32, i32) {
    %c0_i32 = arith.constant 0 : i32
    %c0_i32_0 = arith.constant 0 : i32
    %c0_i32_1 = arith.constant 0 : i32
    return %c0_i32, %c0_i32_0 : i32, i32
  }
  func.func @transform_3(%arg0: i32) -> (i32, i32) {
    %c0_i32 = arith.constant 0 : i32
    %c0_i32_0 = arith.constant 0 : i32
    return %arg0, %c0_i32 : i32, i32
  }
}

</mosaic_0001>

<bundles_post_ra>
// kernel: tpu_custom_call.1
= control target key start
LH: loop header
LB: loop body
LE: loop exit
PB: predicated region body
PF: predicated region fallthrough
CT: control target
= control target key end

     0   :  { %8 = vsyncpa [#allocation3], 0  ;;  %s3280_s0 = inlined_call_operand.hbm [shape: f32[384,1024], index: 0, kind: input, shape index: {}]   ;;  %s3281_s1 = inlined_call_operand.hbm [shape: bf16[1024,256], index: 1, kind: input, shape index: {}]   ;;  %s3282_s2 = inlined_call_operand.hbm [shape: f32[1,256], index: 2, kind: input, shape index: {}]   ;;  %s3283_s3 = inlined_call_operand.hbm [shape: f32[384,256], index: 3, kind: output, shape index: {}]  }
   0x1   :  { %10 = vsyncpa [#allocation3 + $0x1], 0 }
   0x2   :  { %11 = vsyncpa [#allocation6], 0 }
   0x3   :  { %12 = vsyncpa [#allocation4], 0 }
   0x4   :  { %14 = vsyncpa [#allocation4 + $0x1], 0  ;;  %s2650_s12 = smov 0   ;;  %s2652_s13 = smov 0  }
   0x5   :  { %s2654_s14 = smov 0   ;;  %s2656_s15 = smov 0  }
   0x6 LB: > { %s2671_s16 = sadd.s32 4294967295, %s2618_s15   ;;  %s2054_s17 = sadd.s32 4294967294, %s2618_s15   ;;  %s2618_s15 = sphi %s2656_s15, %s3305_s15   ;;  %s2614_s14 = sphi %s2654_s14, %s3304_s14   ;;  %s2610_s13 = sphi %s2652_s13, %s3303_s13   ;;  %s2606_s12 = sphi %s2650_s12, %s3302_s12  }
   0x7   : > { %p40_p0 = scmp.ne.s32.totalorder %s2610_s13, %s2606_s12  ;;  %p3284_p1 = scmp.eq.s32.totalorder %s2671_s16, 0 }
   0x8   : > { %p112_p3 = scmp.eq.s32.totalorder %s2054_s17, 1  ;;  %p2055_p5 = scmp.ge.s32.totalorder %s2618_s15, 1 }
   0x9   : > { %p2680_p4 = por %p3284_p1, %p40_p0  ;;  %p119_p7 = scmp.lt.s32.totalorder %s2618_s15, 3 }
   0xa   : > { %p2685_p6 = por %p112_p3, %p40_p0  ;;  %s2620_s21 = smov [#allocation5]  }
   0xb   : > { %s3288_s18 = scalar_select %p2680_p4, 1, 0 }
   0xc   : > { %s3289_s19 = scalar_select %p2685_p6, 1, 0 }
   0xd   : > { %p2690_p8 = pnand %p2055_p5, %p119_p7  ;;  %s131_s22 = sshll.u32 %s2620_s21, 4  ;;  %s132_s22 = int_to_ptr.vmem [resolvable:$true] %s131_s22 }
   0xe   : > { %s2621_s24 = smov [#allocation7]   ;;  %s2481_s26 = scalar_lea.vmem %s132_s22, 16384 }
   0xf   : > { %s3290_s20 = scalar_select %p2690_p8, 1, 0 }
  0x10   : > { %p2217_p9 = pneg %p2690_p8  ;;  %s145_s25 = sshll.u32 %s2621_s24, 4  ;;  %s146_s25 = int_to_ptr.vmem [resolvable:$true] %s145_s25 }
  0x11   : > { %p2482_p13 = scmp.ne.s32.totalorder %s132_s22, %s2481_s26  ;;  %p2489_p5 = scmp.lt.s32.totalorder %s132_s22, %s132_s22 }
  0x12   : > { %p2699_p11 = pnand %p2217_p9, %p3284_p1  ;;  %p2490_p7 = scmp.lt.s32.totalorder %s2481_s26, %s2481_s26 }
  0x14   : > { %p2472_p12 = pneg %p2699_p11  ;;  %p2491_p10 = por %p2490_p7, %p2489_p5 }
  0x16   : > { %p2484_p0 = pnand %p2482_p13, %p2472_p12 }
  0x18   : > { %p2485_p3 = pneg %p2484_p0 }
  0x1a   : > { %p2492_p9 = pnand %p2491_p10, %p2485_p3 }
  0x1c   : > { %2495 = shalt.err (!%p2492_p9)
}
  0x1d   : > { %s2622_s27 = smov 128   ;;  %s2623_s28 = smov 8  }
  0x1e   : > { %2220 = dma.hbm_to_vmem [thread:$0]  (!%p2699_p11), %s3281_s1, 16384, %s132_s22, [#allocation6], %s2622_s27, %s2622_s27, %s2623_s28  }
  0x1f   : > { %s2507_s4 = scalar_lea.vmem %s146_s25, 32  ;;  %p2515_p2 = scmp.lt.s32.totalorder %s146_s25, %s146_s25 }
  0x20   : > { %p2508_p1 = scmp.ne.s32.totalorder %s146_s25, %s2507_s4  ;;  %p2516_p6 = scmp.lt.s32.totalorder %s2507_s4, %s2507_s4 }
  0x22   : > { %p2510_p13 = pnand %p2508_p1, %p2472_p12  ;;  %p2517_p5 = por %p2516_p6, %p2515_p2 }
  0x24   : > { %p2511_p0 = pneg %p2510_p13 }
  0x26   : > { %p2518_p10 = pnand %p2517_p5, %p2511_p0 }
  0x28   : > { %2521 = shalt.err (!%p2518_p10)
}
  0x29   : > { %2223 = dma.hbm_to_vmem [thread:$0]  (!%p2699_p11), %s3282_s2, 32, %s146_s25, [#allocation6]  }
  0x2a   : > { %s2722_s7 = sadd.s32 1, %s2618_s15   ;;  %s27_s8 = sadd.s32 1, %s2614_s14 }
  0x2b   : > { %s24_s9 = ssub.s32 %s2618_s15, %s2722_s7  ;;  %p34_p1 = scmp.ne.s32.totalorder %s2614_s14, %s2610_s13 }
  0x2c   : > { %p25_p2 = scmp.eq.s32.totalorder %s24_s9, 0  ;;  %p35_p6 = scmp.eq.s32.totalorder %s2618_s15, 0 }
  0x2d   : > { %p3292_p12 = scmp.eq.s32.totalorder %s2671_s16, 1  ;;  %p2234_p7 = scmp.lt.s32.totalorder %s2618_s15, 2 }
  0x2e   : > { %s2738_s11 = scalar_select %p25_p2, %s2614_s14, %s27_s8  }
  0x2f   : > { %p2732_p3 = por %p3292_p12, %p34_p1  ;;  %p36_p9 = por %p35_p6, %p34_p1 }
  0x30   : > { %s156_s17 = sand.u32 1, %s2614_s14   ;;  %s2200_s22 = smul.u32 24576, %s2618_s15 }
  0x31   : > { %s3293_s10 = scalar_select %p2732_p3, 1, 0 }
  0x32   : > { %s2202_s21 = smul.u32 1536, %s156_s17  ;;  %p2742_p11 = pnand %p2234_p7, %p36_p9 }
  0x33   : > { %s2749_s26 = scalar_lea.hbm %s3280_s0, %s2200_s22  ;;  %s2753_s29 = scalar_lea.sflag [#allocation3], %s156_s17 }
  0x34   : > { %s160_s27 = scalar_lea.vmem [#allocation2], %s2202_s21  ;;  %s2522_s30 = scalar_lea.hbm %s2749_s26, 24576 }
  0x35   : > { %s168_s28 = sshll.u32 %s160_s27, 4  ;;  %p2523_p13 = scmp.ne.s32.totalorder %s2749_s26, %s2522_s30  ;;  %s2751_s28 = int_to_ptr.vmem [resolvable:$true] %s168_s28 }
  0x36   : > { %p2524_p0 = pneg %p2742_p11  ;;  %s2527_s6 = scalar_lea.hbm %s3280_s0, 49152 }
  0x37   : > { %p2528_p1 = scmp.lt.s32.totalorder %s2749_s26, %s3280_s0  ;;  %p2529_p2 = scmp.lt.s32.totalorder %s2527_s6, %s2522_s30 }
  0x38   : > { %p2525_p5 = pnand %p2524_p0, %p2523_p13 }
  0x39   : > { %p2530_p6 = por %p2529_p2, %p2528_p1 }
  0x3a   : > { %p2526_p10 = pneg %p2525_p5 }
  0x3c   : > { %p2531_p12 = pnand %p2530_p6, %p2526_p10 }
  0x3e   : > { %2534 = shalt.err (!%p2531_p12)
}
  0x3f   : > { %s2535_s17 = scalar_lea.vmem %s2751_s28, 24576  ;;  %s2624_s21 = smov [#allocation2]  }
  0x40   : > { %p2536_p7 = scmp.ne.s32.totalorder %s2751_s28, %s2535_s17  ;;  %s2540_s22 = sshll.u32 %s2624_s21, 4  ;;  %s2541_s22 = int_to_ptr.vmem [resolvable:$false] %s2540_s22 }
  0x41   : > { %s2542_s24 = scalar_lea.vmem %s2541_s22, 49152  ;;  %p2543_p5 = scmp.lt.s32.totalorder %s2751_s28, %s2541_s22 }
  0x42   : > { %p2538_p9 = pnand %p2536_p7, %p2524_p0  ;;  %p2544_p3 = scmp.lt.s32.totalorder %s2542_s24, %s2535_s17 }
  0x44   : > { %p2539_p13 = pneg %p2538_p9  ;;  %p2545_p4 = por %p2544_p3, %p2543_p5 }
  0x46   : > { %p2546_p8 = pnand %p2545_p4, %p2539_p13 }
  0x48   : > { %2549 = shalt.err (!%p2546_p8)
}
  0x49   : > { %s2625_s25 = smov 1024   ;;  %s2626_s27 = smov 64  }
  0x4a   : > { %2227 = dma.hbm_to_vmem [thread:$0]  (!%p2742_p11), %s2749_s26, 24576, %s2751_s28, %s2753_s29, %s2625_s25, %s2625_s25, %s2626_s27  }
  0x4b   : > { %p3295_p0 = scmp.ne.s32.totalorder %s3290_s20, 0 }
  0x4c   : > { %s2777_s30 = sand.u32 (!%p3295_p0), 1, %s2610_s13   ;;  %p3296_p4 = scmp.ne.s32.totalorder (!%p3295_p0), %s3288_s18, 0 }
  0x4d   : > { %180 = sbr.rel (%p3295_p0) target bundleno = 552 (0x228), region = 32  ;;  %s183_s5 = scalar_lea.sflag (!%p3295_p0), [#allocation3], %s2777_s30 }
  0x4e   : > { %s2203_s4 = smul.u32 (!%p3295_p0), 1536, %s2777_s30 }
  0x50   : > { %s2781_s6 = scalar_lea.vmem (!%p3295_p0), [#allocation2], %s2203_s4 }
  0x52   : > { %2593 = dma.done.wait (%p3296_p4), %s183_s5, 24576  }
  0x53   : > { %2595 = vsyncadd (%p3296_p4), %s183_s5, 4294942720  ;;  %p3297_p8 = scmp.eq.s32.totalorder %s2671_s16, 0 }
  0x55   : > { %2597 = dma.done.wait (%p3297_p8), [#allocation6], 16416   ;;  %p3298_p3 = pmov %p3297_p8 }
  0x56   : > { %v2278_v0 = vld [vmem:[#allocation5 + $0x74] ss:$8 sps:$4 sm:$0xff]   ;;  %v2282_v2 = vld [vmem:[#allocation5 + $0x70] ss:$8 sps:$4 sm:$0xff]   ;;  %v2284_v4 = vld [vmem:[#allocation5 + $0x64] ss:$8 sps:$4 sm:$0xff]  }
  0x57   : > { %2599 = vsyncadd (%p3298_p3), [#allocation6], 4294950880  ;;  %v2280_v1 = vld [vmem:[#allocation5 + $0x174] ss:$8 sps:$4 sm:$0xff]   ;;  %1287 = vmatprep.subr.bf16.mxu0 %v2278_v0  ;;  %v2283_v3 = vld [vmem:[#allocation5 + $0x170] ss:$8 sps:$4 sm:$0xff]  }
  0x58   : > { %1440 = vmatprep.subr.bf16.mxu1 %v2280_v1  ;;  %1288 = vmatpush1.bf16.msra.mxu0 %v2282_v2  ;;  %v2286_v5 = vld [vmem:[#allocation5 + $0x164] ss:$8 sps:$4 sm:$0xff]   ;;  %v2288_v6 = vld [vmem:[#allocation5 + $0x60] ss:$8 sps:$4 sm:$0xff]   ;;  %v2290_v8 = vld [vmem:[#allocation5 + $0x54] ss:$8 sps:$4 sm:$0xff]  }
  0x59   : > { %1441 = vmatpush1.bf16.msra.mxu1 %v2283_v3  ;;  %1289 = vmatprep.subr.bf16.mxu0 %v2284_v4  ;;  %v2289_v7 = vld [vmem:[#allocation5 + $0x160] ss:$8 sps:$4 sm:$0xff]   ;;  %v2292_v9 = vld [vmem:[#allocation5 + $0x154] ss:$8 sps:$4 sm:$0xff]   ;;  %v2294_v10 = vld [vmem:[#allocation5 + $0x50] ss:$8 sps:$4 sm:$0xff]  }
  0x5a   : > { %1442 = vmatprep.subr.bf16.mxu1 %v2286_v5  ;;  %v2295_v11 = vld [vmem:[#allocation5 + $0x150] ss:$8 sps:$4 sm:$0xff]   ;;  %v2296_v12 = vld [vmem:[#allocation5 + $0x44] ss:$8 sps:$4 sm:$0xff]   ;;  %v2300_v14 = vld [vmem:[#allocation5 + $0x40] ss:$8 sps:$4 sm:$0xff]  }
  0x5b   : > { %v2298_v13 = vld [vmem:[#allocation5 + $0x144] ss:$8 sps:$4 sm:$0xff]   ;;  %v2301_v15 = vld [vmem:[#allocation5 + $0x140] ss:$8 sps:$4 sm:$0xff]   ;;  %v2302_v16 = vld [vmem:[#allocation5 + $0x34] ss:$8 sps:$4 sm:$0xff]  }
  0x5c   : > { %1290 = vmatpush1.bf16.msra.mxu0 %v2288_v6  ;;  %v2304_v17 = vld [vmem:[#allocation5 + $0x134] ss:$8 sps:$4 sm:$0xff]   ;;  %v2306_v18 = vld [vmem:[#allocation5 + $0x30] ss:$8 sps:$4 sm:$0xff]   ;;  %v2308_v20 = vld [vmem:[#allocation5 + $0x24] ss:$8 sps:$4 sm:$0xff]  }
  0x5d   : > { %1443 = vmatpush1.bf16.msra.mxu1 %v2289_v7  ;;  %1291 = vmatprep.subr.bf16.mxu0 %v2290_v8  ;;  %v2307_v19 = vld [vmem:[#allocation5 + $0x130] ss:$8 sps:$4 sm:$0xff]   ;;  %v2310_v21 = vld [vmem:[#allocation5 + $0x124] ss:$8 sps:$4 sm:$0xff]   ;;  %v2312_v22 = vld [vmem:[#allocation5 + $0x20] ss:$8 sps:$4 sm:$0xff]  }
  0x5e   : > { %1444 = vmatprep.subr.bf16.mxu1 %v2292_v9  ;;  %v2313_v23 = vld [vmem:[#allocation5 + $0x120] ss:$8 sps:$4 sm:$0xff]   ;;  %v2314_v24 = vld [vmem:[#allocation5 + $0x14] ss:$8 sps:$4 sm:$0xff]   ;;  %v2318_v26 = vld [vmem:[#allocation5 + $0x10] ss:$8 sps:$4 sm:$0xff]  }
  0x5f   : > { %v2316_v25 = vld [vmem:[#allocation5 + $0x114] ss:$8 sps:$4 sm:$0xff]   ;;  %v2319_v27 = vld [vmem:[#allocation5 + $0x110] ss:$8 sps:$4 sm:$0xff]   ;;  %v2320_v28 = vld [vmem:[#allocation5 + $0x4] ss:$8 sps:$4 sm:$0xff]  }
  0x60   : > { %1292 = vmatpush1.bf16.msra.mxu0 %v2294_v10  ;;  %v2322_v29 = vld [vmem:[#allocation5 + $0x104] ss:$8 sps:$4 sm:$0xff]   ;;  %v2324_v30 = vld [vmem:[#allocation5] ss:$8 sps:$4 sm:$0xff]   ;;  %v2326_v32 = vld [vmem:[#allocation5 + $0xf4] ss:$8 sps:$4 sm:$0xff]  }
  0x61   : > { %1445 = vmatpush1.bf16.msra.mxu1 %v2295_v11  ;;  %1293 = vmatprep.subr.bf16.mxu0 %v2296_v12  ;;  %v2325_v31 = vld [vmem:[#allocation5 + $0x100] ss:$8 sps:$4 sm:$0xff]   ;;  %v2328_v33 = vld [vmem:[#allocation5 + $0x1f4] ss:$8 sps:$4 sm:$0xff]   ;;  %v2330_v34 = vld [vmem:[#allocation5 + $0xf0] ss:$8 sps:$4 sm:$0xff]  }
  0x62   : > { %1446 = vmatprep.subr.bf16.mxu1 %v2298_v13  ;;  %v2331_v35 = vld [vmem:[#allocation5 + $0x1f0] ss:$8 sps:$4 sm:$0xff]   ;;  %v2332_v36 = vld [vmem:[#allocation5 + $0xe4] ss:$8 sps:$4 sm:$0xff]   ;;  %v2336_v38 = vld [vmem:[#allocation5 + $0xe0] ss:$8 sps:$4 sm:$0xff]  }
  0x63   : > { %v2334_v37 = vld [vmem:[#allocation5 + $0x1e4] ss:$8 sps:$4 sm:$0xff]   ;;  %v2337_v39 = vld [vmem:[#allocation5 + $0x1e0] ss:$8 sps:$4 sm:$0xff]   ;;  %v2338_v40 = vld [vmem:[#allocation5 + $0xd4] ss:$8 sps:$4 sm:$0xff]  }
  0x64   : > { %1294 = vmatpush1.bf16.msra.mxu0 %v2300_v14  ;;  %v2340_v41 = vld [vmem:[#allocation5 + $0x1d4] ss:$8 sps:$4 sm:$0xff]   ;;  %v2342_v42 = vld [vmem:[#allocation5 + $0xd0] ss:$8 sps:$4 sm:$0xff]   ;;  %v2344_v44 = vld [vmem:[#allocation5 + $0xc4] ss:$8 sps:$4 sm:$0xff]  }
  0x65   : > { %1447 = vmatpush1.bf16.msra.mxu1 %v2301_v15  ;;  %1295 = vmatprep.subr.bf16.mxu0 %v2302_v16  ;;  %v2343_v43 = vld [vmem:[#allocation5 + $0x1d0] ss:$8 sps:$4 sm:$0xff]   ;;  %v2346_v45 = vld [vmem:[#allocation5 + $0x1c4] ss:$8 sps:$4 sm:$0xff]   ;;  %v2348_v50 = vld [vmem:[#allocation5 + $0xc0] ss:$8 sps:$4 sm:$0xff]  }
  0x66   : > { %1448 = vmatprep.subr.bf16.mxu1 %v2304_v17  ;;  %v220_v46 = vld [vmem:[%s2781_s6 + $0x8] sm:$0xff]  ;;  %v222_v48 = vld [vmem:[%s2781_s6 + $0x18] sm:$0xff]  ;;  %v219_v6 = vld [vmem:[%s2781_s6] sm:$0xff]  ;;  %s2204_s18 = smul.u32 384, %s2777_s30  ;;  %p3299_p10 = scmp.ne.s32.totalorder %s3293_s10, 0 }
  0x67   : > { %v228_v47 = vld [vmem:[%s2781_s6 + $0x48] sm:$0xff]  ;;  %v230_v49 = vld [vmem:[%s2781_s6 + $0x58] sm:$0xff]  ;;  %v227_v7 = vld [vmem:[%s2781_s6 + $0x40] sm:$0xff]  ;;  %s2201_s23 = smul.u32 6144, %s2671_s16  ;;  %s1948_s16 = scalar_lea.sflag [#allocation4], %s2777_s30 }
  0x68   : > { %1296 = vmatpush1.bf16.msra.mxu0 %v2306_v18  ;;  %v2349_v51 = vld [vmem:[#allocation5 + $0x1c0] ss:$8 sps:$4 sm:$0xff]   ;;  %v2350_v52 = vld [vmem:[#allocation5 + $0xb4] ss:$8 sps:$4 sm:$0xff]   ;;  %v412_v53 = vpack.c.bf16 %v228_v47, %v220_v46  ;;  %v414_v54 = vpack.c.bf16 %v230_v49, %v222_v48  ;;  %v2354_v56 = vld [vmem:[#allocation5 + $0xb0] ss:$8 sps:$4 sm:$0xff]   ;;  %v411_v14 = vpack.c.bf16 %v227_v7, %v219_v6 }
  0x69   : > { %1449 = vmatpush1.bf16.msra.mxu1 %v2307_v19  ;;  %1297 = vmatprep.subr.bf16.mxu0 %v2308_v20  ;;  %v2352_v55 = vld [vmem:[#allocation5 + $0x1b4] ss:$8 sps:$4 sm:$0xff]   ;;  %v2355_v57 = vld [vmem:[#allocation5 + $0x1b0] ss:$8 sps:$4 sm:$0xff]   ;;  %v2356_v58 = vld [vmem:[#allocation5 + $0xa4] ss:$8 sps:$4 sm:$0xff]   ;;  %s3233_s8 = scalar_lea.hbm %s3283_s3, %s2201_s23 }
  0x6a   : > { %1450 = vmatprep.subr.bf16.mxu1 %v2310_v21  ;;  %1319 = vmatprep.mubr.bf16.mxu0 %v412_v53  ;;  %v2358_v59 = vld [vmem:[#allocation5 + $0x1a4] ss:$8 sps:$4 sm:$0xff]   ;;  %v2360_v60 = vld [vmem:[#allocation5 + $0xa0] ss:$8 sps:$4 sm:$0xff]   ;;  %v2362_v62 = vld [vmem:[#allocation5 + $0x94] ss:$8 sps:$4 sm:$0xff]  }
  0x6b   : > { %1472 = vmatprep.mubr.bf16.mxu1 %v414_v54  ;;  %v2361_v61 = vld [vmem:[#allocation5 + $0x1a0] ss:$8 sps:$4 sm:$0xff]   ;;  %v2364_v63 = vld [vmem:[#allocation5 + $0x194] ss:$8 sps:$4 sm:$0xff]   ;;  %v2366_v0 = vld [vmem:[#allocation5 + $0x90] ss:$8 sps:$4 sm:$0xff]  }
  0x6c   : > { %1298 = vmatpush1.bf16.msra.mxu0 %v2312_v22  ;;  %v2367_v1 = vld [vmem:[#allocation5 + $0x190] ss:$8 sps:$4 sm:$0xff]   ;;  %v2368_v2 = vld [vmem:[#allocation5 + $0x84] ss:$8 sps:$4 sm:$0xff]   ;;  %v2372_v4 = vld [vmem:[#allocation5 + $0x80] ss:$8 sps:$4 sm:$0xff]  }
  0x6d   : > { %1451 = vmatpush1.bf16.msra.mxu1 %v2313_v23  ;;  %1299 = vmatprep.subr.bf16.mxu0 %v2314_v24  ;;  %v2370_v3 = vld [vmem:[#allocation5 + $0x184] ss:$8 sps:$4 sm:$0xff]   ;;  %v2373_v5 = vld [vmem:[#allocation5 + $0x180] ss:$8 sps:$4 sm:$0xff]   ;;  %v221_v8 = vld [vmem:[%s2781_s6 + $0x10] sm:$0xff]  ;;  %s3134_s20 = scalar_lea.vmem [#allocation8], %s2204_s18 }
  0x6e   : > { %1452 = vmatprep.subr.bf16.mxu1 %v2316_v25  ;;  %v229_v9 = vld [vmem:[%s2781_s6 + $0x50] sm:$0xff]  ;;  %v236_v12 = vld [vmem:[%s2781_s6 + $0x88] sm:$0xff]  ;;  %v238_v17 = vld [vmem:[%s2781_s6 + $0x98] sm:$0xff]  ;;  %s1962_s26 = sshll.u32 %s3134_s20, 4  ;;  %s2627_s17 = smov [#allocation8]   ;;  %s3235_s26 = int_to_ptr.vmem [resolvable:$true] %s1962_s26 }
  0x6f   : > { %v2376_v10 = vld [vmem:[#allocation5 + $0x274] ss:$8 sps:$4 sm:$0xff]   ;;  %v244_v13 = vld [vmem:[%s2781_s6 + $0xc8] sm:$0xff]  ;;  %v413_v15 = vpack.c.bf16 %v229_v9, %v221_v8  ;;  %v2374_v16 = vld [vmem:[#allocation5 + $0x270] ss:$8 sps:$4 sm:$0xff]   ;;  %s2550_s9 = scalar_lea.vmem %s3235_s26, 6144 }
  0x70   : > { %1300 = vmatpush1.bf16.msra.mxu0 %v2318_v26  ;;  %v2379_v11 = vld [vmem:[#allocation5 + $0x374] ss:$8 sps:$4 sm:$0xff]   ;;  %v2377_v19 = vld [vmem:[#allocation5 + $0x370] ss:$8 sps:$4 sm:$0xff]   ;;  %v2382_v20 = vld [vmem:[#allocation5 + $0x264] ss:$8 sps:$4 sm:$0xff]   ;;  %v420_v21 = vpack.c.bf16 %v244_v13, %v236_v12  ;;  %p2551_p11 = scmp.ne.s32.totalorder %s3235_s26, %s2550_s9 }
  0x71   : > { %1453 = vmatpush1.bf16.msra.mxu1 %v2319_v27  ;;  %1301 = vmatprep.subr.bf16.mxu0 %v2320_v28  ;;  %v246_v18 = vld [vmem:[%s2781_s6 + $0xd8] sm:$0xff]  ;;  %v2380_v22 = vld [vmem:[#allocation5 + $0x260] ss:$8 sps:$4 sm:$0xff]   ;;  %v2385_v25 = vld [vmem:[#allocation5 + $0x364] ss:$8 sps:$4 sm:$0xff]   ;;  %s2554_s21 = sshll.u32 %s2627_s17, 4  ;;  %s2555_s21 = int_to_ptr.vmem [resolvable:$false] %s2554_s21 }
  0x72   : > { %1454 = vmatprep.subr.bf16.mxu1 %v2322_v29  ;;  %v422_v23 = vpack.c.bf16 %v246_v18, %v238_v17  ;;  %v235_v24 = vld [vmem:[%s2781_s6 + $0x80] sm:$0xff]  ;;  %v237_v27 = vld [vmem:[%s2781_s6 + $0x90] sm:$0xff]  ;;  %v278_v53 = vld [vmem:[%s2781_s6 + $0x1d8] sm:$0xff]  ;;  %p2552_p1 = pnand %p2551_p11, %p3299_p10  ;;  %s2556_s22 = scalar_lea.vmem %s2555_s21, 12288 }
  0x73   : > { %v243_v26 = vld [vmem:[%s2781_s6 + $0xc0] sm:$0xff]  ;;  %v245_v28 = vld [vmem:[%s2781_s6 + $0xd0] sm:$0xff]  ;;  %v292_v6 = vld [vmem:[%s2781_s6 + $0x248] sm:$0xff]  ;;  %p2557_p6 = scmp.lt.s32.totalorder %s3235_s26, %s2555_s21  ;;  %p2558_p12 = scmp.lt.s32.totalorder %s2556_s22, %s2550_s9 }
  0x74   : > { %1302 = vmatpush1.bf16.msra.mxu0 %v2324_v30  ;;  %v2383_v29 = vld [vmem:[#allocation5 + $0x360] ss:$8 sps:$4 sm:$0xff]   ;;  %v2388_v30 = vld [vmem:[#allocation5 + $0x254] ss:$8 sps:$4 sm:$0xff]   ;;  %v2394_v46 = vld [vmem:[#allocation5 + $0x244] ss:$8 sps:$4 sm:$0xff]   ;;  %p2553_p2 = pneg %p2552_p1 }
  0x75   : > { %1455 = vmatpush1.bf16.msra.mxu1 %v2325_v31  ;;  %1303 = vmatprep.subr.bf16.mxu0 %v2326_v32  ;;  %v2391_v31 = vld [vmem:[#allocation5 + $0x354] ss:$8 sps:$4 sm:$0xff]   ;;  %v252_v32 = vld [vmem:[%s2781_s6 + $0x108] sm:$0xff]  ;;  %v2413_v17 = vld [vmem:[#allocation5 + $0x310] ss:$8 sps:$4 sm:$0xff]   ;;  %p2559_p7 = por %p2558_p12, %p2557_p6 }
  0x76   : > { %1456 = vmatprep.subr.bf16.mxu1 %v2328_v33  ;;  %v260_v33 = vld [vmem:[%s2781_s6 + $0x148] sm:$0xff]  ;;  %v2400_v54 = vld [vmem:[#allocation5 + $0x234] ss:$8 sps:$4 sm:$0xff]   ;;  %v283_v18 = vld [vmem:[%s2781_s6 + $0x200] sm:$0xff] }
  0x77   : > { %v2397_v47 = vld [vmem:[#allocation5 + $0x344] ss:$8 sps:$4 sm:$0xff]   ;;  %v2392_v48 = vld [vmem:[#allocation5 + $0x240] ss:$8 sps:$4 sm:$0xff]   ;;  %v286_v7 = vld [vmem:[%s2781_s6 + $0x218] sm:$0xff]  ;;  %p2560_p9 = pnand %p2559_p7, %p2553_p2 }
  0x78   : > { %1304 = vmatpush2.bf16.msra.mxu0 %v2330_v34  ;;  %v254_v34 = vld [vmem:[%s2781_s6 + $0x118] sm:$0xff]  ;;  %v2395_v49 = vld [vmem:[#allocation5 + $0x340] ss:$8 sps:$4 sm:$0xff]  }
  0x79   : > { %1457 = vmatpush2.bf16.msra.mxu1 %v2331_v35  ;;  %1305 = vmatprep.subr.bf16.mxu0 %v2332_v36  ;;  %v262_v35 = vld [vmem:[%s2781_s6 + $0x158] sm:$0xff]  ;;  %v419_v36 = vpack.c.bf16 %v243_v26, %v235_v24  ;;  %v2407_v9 = vld [vmem:[#allocation5 + $0x320] ss:$8 sps:$4 sm:$0xff]  }
  0x7a   : > { %1458 = vmatprep.subr.bf16.mxu1 %v2334_v37  ;;  %v421_v37 = vpack.c.bf16 %v245_v28, %v237_v27  ;;  %v294_v8 = vld [vmem:[%s2781_s6 + $0x258] sm:$0xff]  ;;  %v300_v24 = vld [vmem:[%s2781_s6 + $0x288] sm:$0xff] }
  0x7b   : > { %v302_v26 = vld [vmem:[%s2781_s6 + $0x298] sm:$0xff]  ;;  %v2416_v28 = vld [vmem:[#allocation5 + $0x200] ss:$8 sps:$4 sm:$0xff]  }
  0x7c   : > { %1306 = vmatpush2.bf16.msra.mxu0 %v2336_v38  ;;  %v2386_v38 = vld [vmem:[#allocation5 + $0x250] ss:$8 sps:$4 sm:$0xff]  }
  0x7d   : > { %1459 = vmatpush2.bf16.msra.mxu1 %v2337_v39  ;;  %1307 = vmatprep.subr.bf16.mxu0 %v2338_v40  ;;  %v428_v39 = vpack.c.bf16 %v260_v33, %v252_v32  ;;  %v2389_v40 = vld [vmem:[#allocation5 + $0x350] ss:$8 sps:$4 sm:$0xff]  }
  0x7e   : > { %1460 = vmatprep.subr.bf16.mxu1 %v2340_v41  ;;  %v430_v41 = vpack.c.bf16 %v262_v35, %v254_v34  ;;  %v310_v27 = vld [vmem:[%s2781_s6 + $0x2d8] sm:$0xff] }
  0x7f   : > { %v454_v35 = vpack.c.bf16 %v310_v27, %v302_v26  ;;  %v2460_v26 = vld [vmem:[#allocation5 + $0x294] ss:$8 sps:$4 sm:$0xff]  }
  0x80   : > { %1308 = vmatpush2.bf16.msra.mxu0 %v2342_v42  ;;  %v251_v42 = vld [vmem:[%s2781_s6 + $0x100] sm:$0xff]  ;;  %v2463_v27 = vld [vmem:[#allocation5 + $0x394] ss:$8 sps:$4 sm:$0xff]  }
  0x81   : > { %1461 = vmatpush2.bf16.msra.mxu1 %v2343_v43  ;;  %1309 = vmatprep.subr.bf16.mxu0 %v2344_v44  ;;  %v259_v43 = vld [vmem:[%s2781_s6 + $0x140] sm:$0xff]  ;;  %v253_v44 = vld [vmem:[%s2781_s6 + $0x110] sm:$0xff] }
  0x82   : > { %1462 = vmatprep.subr.bf16.mxu1 %v2346_v45  ;;  %v261_v45 = vld [vmem:[%s2781_s6 + $0x150] sm:$0xff] }
  0x84   : > { %1310 = vmatpush2.bf16.msra.mxu0 %v2348_v50  ;;  %v268_v50 = vld [vmem:[%s2781_s6 + $0x188] sm:$0xff] }
  0x85   : > { %1463 = vmatpush2.bf16.msra.mxu1 %v2349_v51  ;;  %1311 = vmatprep.subr.bf16.mxu0 %v2350_v52  ;;  %v276_v51 = vld [vmem:[%s2781_s6 + $0x1c8] sm:$0xff]  ;;  %v270_v52 = vld [vmem:[%s2781_s6 + $0x198] sm:$0xff] }
  0x86   : > { %1464 = vmatprep.subr.bf16.mxu1 %v2352_v55  ;;  %v2403_v55 = vld [vmem:[#allocation5 + $0x334] ss:$8 sps:$4 sm:$0xff]  }
  0x88   : > { %1312 = vmatpush2.bf16.msra.mxu0 %v2354_v56  ;;  %v427_v56 = vpack.c.bf16 %v259_v43, %v251_v42  ;;  %v2433_v42 = vld [vmem:[#allocation5 + $0x3e4] ss:$8 sps:$4 sm:$0xff]   ;;  %v309_v43 = vld [vmem:[%s2781_s6 + $0x2d0] sm:$0xff] }
  0x89   : > { %1465 = vmatpush2.bf16.msra.mxu1 %v2355_v57  ;;  %1313 = vmatprep.subr.bf16.mxu0 %v2356_v58  ;;  %v429_v57 = vpack.c.bf16 %v261_v45, %v253_v44  ;;  %v436_v58 = vpack.c.bf16 %v276_v51, %v268_v50  ;;  %v316_v44 = vld [vmem:[%s2781_s6 + $0x308] sm:$0xff]  ;;  %v2436_v50 = vld [vmem:[#allocation5 + $0x2d4] ss:$8 sps:$4 sm:$0xff]  }
  0x8a   : > { %1466 = vmatprep.subr.bf16.mxu1 %v2358_v59  ;;  %v438_v59 = vpack.c.bf16 %v278_v53, %v270_v52  ;;  %v324_v45 = vld [vmem:[%s2781_s6 + $0x348] sm:$0xff]  ;;  %v2439_v51 = vld [vmem:[#allocation5 + $0x3d4] ss:$8 sps:$4 sm:$0xff]  }
  0x8c   : > { %1314 = vmatpush2.bf16.msra.mxu0 %v2360_v60  ;;  %v2398_v60 = vld [vmem:[#allocation5 + $0x230] ss:$8 sps:$4 sm:$0xff]  }
  0x8d   : > { %1467 = vmatpush2.bf16.msra.mxu1 %v2361_v61  ;;  %1315 = vmatprep.subr.bf16.mxu0 %v2362_v62  ;;  %v2401_v61 = vld [vmem:[#allocation5 + $0x330] ss:$8 sps:$4 sm:$0xff]   ;;  %v267_v62 = vld [vmem:[%s2781_s6 + $0x180] sm:$0xff] }
  0x8e   : > { %1468 = vmatprep.subr.bf16.mxu1 %v2364_v63  ;;  %v275_v63 = vld [vmem:[%s2781_s6 + $0x1c0] sm:$0xff] }
  0x8f   : > { %v435_v12 = vpack.c.bf16 %v275_v63, %v267_v62  ;;  %v2442_v62 = vld [vmem:[#allocation5 + $0x2c4] ss:$8 sps:$4 sm:$0xff]  }
  0x90   : > { %1316 = vmatpush2.bf16.msra.mxu0 %v2366_v0  ;;  %v269_v0 = vld [vmem:[%s2781_s6 + $0x190] sm:$0xff]  ;;  %v2445_v63 = vld [vmem:[#allocation5 + $0x3c4] ss:$8 sps:$4 sm:$0xff]  }
  0x91   : > { %1469 = vmatpush2.bf16.msra.mxu1 %v2367_v1  ;;  %1317 = vmatprep.subr.bf16.mxu0 %v2368_v2  ;;  %v277_v1 = vld [vmem:[%s2781_s6 + $0x1d0] sm:$0xff]  ;;  %v2406_v2 = vld [vmem:[#allocation5 + $0x224] ss:$8 sps:$4 sm:$0xff]  }
  0x92   : > { %1470 = vmatprep.subr.bf16.mxu1 %v2370_v3  ;;  %v2409_v3 = vld [vmem:[#allocation5 + $0x324] ss:$8 sps:$4 sm:$0xff]   ;;  %v437_v13 = vpack.c.bf16 %v277_v1, %v269_v0 }
  0x93   : > { %v332_v0 = vld [vmem:[%s2781_s6 + $0x388] sm:$0xff] }
  0x94   : > { %1318 = vmatpush2.bf16.msra.mxu0 %v2372_v4  ;;  %v2404_v4 = vld [vmem:[#allocation5 + $0x220] ss:$8 sps:$4 sm:$0xff]  }
  0x95   : > { %1471 = vmatpush2.bf16.msra.mxu1 %v2373_v5  ;;  %1593 = vmatprep.subr.bf16.mxu0 %v2376_v10  ;;  %v284_v5 = vld [vmem:[%s2781_s6 + $0x208] sm:$0xff]  ;;  %v2412_v10 = vld [vmem:[#allocation5 + $0x214] ss:$8 sps:$4 sm:$0xff]  }
  0x96   : > { %1746 = vmatprep.subr.bf16.mxu1 %v2379_v11  ;;  %v2415_v11 = vld [vmem:[#allocation5 + $0x314] ss:$8 sps:$4 sm:$0xff]   ;;  %v340_v1 = vld [vmem:[%s2781_s6 + $0x3c8] sm:$0xff] }
  0x97   : > { %1320 = vmatmul.mubr.bf16.vlgmr.msra.gmra.mxu0 %v411_v14  ;;  %v444_v14 = vpack.c.bf16 %v292_v6, %v284_v5  ;;  %v2443_v5 = vld [vmem:[#allocation5 + $0x3c0] ss:$8 sps:$4 sm:$0xff]   ;;  %v2448_v6 = vld [vmem:[#allocation5 + $0x2b4] ss:$8 sps:$4 sm:$0xff]  }
  0x98   : > { %1473 = vmatmul.mubr.bf16.vlgmr.msra.gmra.mxu1 %v413_v15  ;;  %1594 = vmatpush1.bf16.msra.mxu0 %v2374_v16  ;;  %v446_v15 = vpack.c.bf16 %v294_v8, %v286_v7  ;;  %v2410_v16 = vld [vmem:[#allocation5 + $0x210] ss:$8 sps:$4 sm:$0xff]   ;;  %v2451_v7 = vld [vmem:[#allocation5 + $0x3b4] ss:$8 sps:$4 sm:$0xff]  }
  0x99   : > { %1747 = vmatpush1.bf16.msra.mxu1 %v2377_v19  ;;  %1595 = vmatprep.subr.bf16.mxu0 %v2382_v20  ;;  %v291_v19 = vld [vmem:[%s2781_s6 + $0x240] sm:$0xff]  ;;  %v285_v20 = vld [vmem:[%s2781_s6 + $0x210] sm:$0xff] }
  0x9a   : > { %1329 = vmatprep.mubr.bf16.mxu0 %v420_v21  ;;  %1482 = vmatprep.mubr.bf16.mxu1 %v422_v23  ;;  %v293_v21 = vld [vmem:[%s2781_s6 + $0x250] sm:$0xff]  ;;  %v2421_v23 = vld [vmem:[#allocation5 + $0x304] ss:$8 sps:$4 sm:$0xff]   ;;  %v443_v32 = vpack.c.bf16 %v291_v19, %v283_v18 }
  0x9b   : > { %1748 = vmatprep.subr.bf16.mxu1 %v2385_v25  ;;  %v308_v25 = vld [vmem:[%s2781_s6 + $0x2c8] sm:$0xff]  ;;  %v445_v33 = vpack.c.bf16 %v293_v21, %v285_v20 }
  0x9c   : > { %1596 = vmatpush1.bf16.msra.mxu0 %v2380_v22  ;;  %v2418_v22 = vld [vmem:[#allocation5 + $0x204] ss:$8 sps:$4 sm:$0xff]   ;;  %v452_v34 = vpack.c.bf16 %v308_v25, %v300_v24  ;;  %v2452_v24 = vld [vmem:[#allocation5 + $0x2a0] ss:$8 sps:$4 sm:$0xff]  }
  0x9d   : > { %1749 = vmatpush1.bf16.msra.mxu1 %v2383_v29  ;;  %1597 = vmatprep.subr.bf16.mxu0 %v2388_v30  ;;  %v2419_v29 = vld [vmem:[#allocation5 + $0x300] ss:$8 sps:$4 sm:$0xff]   ;;  %v2424_v30 = vld [vmem:[#allocation5 + $0x2f4] ss:$8 sps:$4 sm:$0xff]   ;;  %v2454_v18 = vld [vmem:[#allocation5 + $0x2a4] ss:$8 sps:$4 sm:$0xff]  }
  0x9e   : > { %1750 = vmatprep.subr.bf16.mxu1 %v2391_v31  ;;  %v2427_v31 = vld [vmem:[#allocation5 + $0x3f4] ss:$8 sps:$4 sm:$0xff]   ;;  %v2457_v19 = vld [vmem:[#allocation5 + $0x3a4] ss:$8 sps:$4 sm:$0xff]   ;;  %v2455_v25 = vld [vmem:[#allocation5 + $0x3a0] ss:$8 sps:$4 sm:$0xff]  }
  0x9f   : > { %1330 = vmatmul.mubr.bf16.gmra.mxu0 %v419_v36  ;;  %v2422_v36 = vld [vmem:[#allocation5 + $0x2f0] ss:$8 sps:$4 sm:$0xff]   ;;  %v348_v20 = vld [vmem:[%s2781_s6 + $0x408] sm:$0xff] }
  0xa0   : > { %1483 = vmatmul.mubr.bf16.gmra.mxu1 %v421_v37  ;;  %1598 = vmatpush1.bf16.msra.mxu0 %v2386_v38  ;;  %v2425_v37 = vld [vmem:[#allocation5 + $0x3f0] ss:$8 sps:$4 sm:$0xff]   ;;  %v299_v38 = vld [vmem:[%s2781_s6 + $0x280] sm:$0xff]  ;;  %v356_v21 = vld [vmem:[%s2781_s6 + $0x448] sm:$0xff] }
  0xa1   : > { %1339 = vmatprep.mubr.bf16.mxu0 %v428_v39  ;;  %1492 = vmatprep.mubr.bf16.mxu1 %v430_v41  ;;  %v307_v39 = vld [vmem:[%s2781_s6 + $0x2c0] sm:$0xff] }
  0xa2   : > { %1751 = vmatpush1.bf16.msra.mxu1 %v2389_v40  ;;  %1599 = vmatprep.subr.bf16.mxu0 %v2394_v46  ;;  %v301_v40 = vld [vmem:[%s2781_s6 + $0x290] sm:$0xff]  ;;  %v2430_v41 = vld [vmem:[#allocation5 + $0x2e4] ss:$8 sps:$4 sm:$0xff]   ;;  %v318_v46 = vld [vmem:[%s2781_s6 + $0x318] sm:$0xff]  ;;  %v451_v52 = vpack.c.bf16 %v307_v39, %v299_v38 }
  0xa3   : > { %1752 = vmatprep.subr.bf16.mxu1 %v2397_v47  ;;  %v326_v47 = vld [vmem:[%s2781_s6 + $0x358] sm:$0xff]  ;;  %v453_v53 = vpack.c.bf16 %v309_v43, %v301_v40  ;;  %v349_v38 = vld [vmem:[%s2781_s6 + $0x410] sm:$0xff]  ;;  %v364_v40 = vld [vmem:[%s2781_s6 + $0x488] sm:$0xff] }
  0xa4   : > { %1600 = vmatpush1.bf16.msra.mxu0 %v2392_v48  ;;  %v2428_v48 = vld [vmem:[#allocation5 + $0x2e0] ss:$8 sps:$4 sm:$0xff]   ;;  %v357_v39 = vld [vmem:[%s2781_s6 + $0x450] sm:$0xff]  ;;  %v374_v43 = vld [vmem:[%s2781_s6 + $0x4d8] sm:$0xff] }
  0xa5   : > { %1601 = vmatprep.subr.bf16.mxu0 %v2400_v54  ;;  %v460_v54 = vpack.c.bf16 %v324_v45, %v316_v44  ;;  %v2464_v44 = vld [vmem:[#allocation5 + $0x280] ss:$8 sps:$4 sm:$0xff]  }
  0xa6   : > { %1753 = vmatpush1.bf16.msra.mxu1 %v2395_v49  ;;  %v2431_v49 = vld [vmem:[#allocation5 + $0x3e0] ss:$8 sps:$4 sm:$0xff]  }
  0xa7   : > { %1754 = vmatprep.subr.bf16.mxu1 %v2403_v55  ;;  %1340 = vmatmul.mubr.bf16.gmra.mxu0 %v427_v56  ;;  %v462_v55 = vpack.c.bf16 %v326_v47, %v318_v46  ;;  %v2434_v56 = vld [vmem:[#allocation5 + $0x2d0] ss:$8 sps:$4 sm:$0xff]   ;;  %v2467_v45 = vld [vmem:[#allocation5 + $0x380] ss:$8 sps:$4 sm:$0xff]   ;;  %v477_v47 = vpack.c.bf16 %v357_v39, %v349_v38 }
  0xa8   : > { %1493 = vmatmul.mubr.bf16.gmra.mxu1 %v429_v57  ;;  %1349 = vmatprep.mubr.bf16.mxu0 %v436_v58  ;;  %v2437_v57 = vld [vmem:[#allocation5 + $0x3d0] ss:$8 sps:$4 sm:$0xff]   ;;  %v315_v58 = vld [vmem:[%s2781_s6 + $0x300] sm:$0xff]  ;;  %v256_v38 = vld [vmem:[%s2781_s6 + $0x128] sm:$0xff] }
  0xa9   : > { %1502 = vmatprep.mubr.bf16.mxu1 %v438_v59  ;;  %1602 = vmatpush1.bf16.msra.mxu0 %v2398_v60  ;;  %v323_v59 = vld [vmem:[%s2781_s6 + $0x340] sm:$0xff]  ;;  %v317_v60 = vld [vmem:[%s2781_s6 + $0x310] sm:$0xff]  ;;  %v264_v39 = vld [vmem:[%s2781_s6 + $0x168] sm:$0xff] }
  0xaa   : > { %1755 = vmatpush1.bf16.msra.mxu1 %v2401_v61  ;;  %1603 = vmatprep.subr.bf16.mxu0 %v2406_v2  ;;  %v325_v61 = vld [vmem:[%s2781_s6 + $0x350] sm:$0xff]  ;;  %v334_v2 = vld [vmem:[%s2781_s6 + $0x398] sm:$0xff]  ;;  %v459_v8 = vpack.c.bf16 %v323_v59, %v315_v58 }
  0xab   : > { %1756 = vmatprep.subr.bf16.mxu1 %v2409_v3  ;;  %v342_v3 = vld [vmem:[%s2781_s6 + $0x3d8] sm:$0xff] }
  0xad   : > { %1604 = vmatpush1.bf16.msra.mxu0 %v2404_v4  ;;  %v2440_v4 = vld [vmem:[#allocation5 + $0x2c0] ss:$8 sps:$4 sm:$0xff]  }
  0xae   : > { %1757 = vmatpush1.bf16.msra.mxu1 %v2407_v9  ;;  %1605 = vmatprep.subr.bf16.mxu0 %v2412_v10  ;;  %v461_v9 = vpack.c.bf16 %v325_v61, %v317_v60  ;;  %v468_v10 = vpack.c.bf16 %v340_v1, %v332_v0  ;;  %v381_v0 = vld [vmem:[%s2781_s6 + $0x510] sm:$0xff] }
  0xaf   : > { %1758 = vmatprep.subr.bf16.mxu1 %v2415_v11  ;;  %1350 = vmatmul.mubr.bf16.gmra.mxu0 %v435_v12  ;;  %v470_v11 = vpack.c.bf16 %v342_v3, %v334_v2  ;;  %v2446_v12 = vld [vmem:[#allocation5 + $0x2b0] ss:$8 sps:$4 sm:$0xff]   ;;  %v396_v2 = vld [vmem:[%s2781_s6 + $0x588] sm:$0xff] }
  0xb0   : > { %1503 = vmatmul.mubr.bf16.gmra.mxu1 %v437_v13  ;;  %1359 = vmatprep.mubr.bf16.mxu0 %v444_v14  ;;  %v2449_v13 = vld [vmem:[#allocation5 + $0x3b0] ss:$8 sps:$4 sm:$0xff]   ;;  %v331_v14 = vld [vmem:[%s2781_s6 + $0x380] sm:$0xff]  ;;  %v404_v3 = vld [vmem:[%s2781_s6 + $0x5c8] sm:$0xff] }
  0xb1   : > { %1512 = vmatprep.mubr.bf16.mxu1 %v446_v15  ;;  %1606 = vmatpush1.bf16.msra.mxu0 %v2410_v16  ;;  %v339_v15 = vld [vmem:[%s2781_s6 + $0x3c0] sm:$0xff]  ;;  %v333_v16 = vld [vmem:[%s2781_s6 + $0x390] sm:$0xff] }
  0xb2   : > { %1759 = vmatpush1.bf16.msra.mxu1 %v2413_v17  ;;  %1607 = vmatprep.subr.bf16.mxu0 %v2418_v22  ;;  %v341_v17 = vld [vmem:[%s2781_s6 + $0x3d0] sm:$0xff]  ;;  %v350_v22 = vld [vmem:[%s2781_s6 + $0x418] sm:$0xff] }
  0xb3   : > { %1760 = vmatprep.subr.bf16.mxu1 %v2421_v23  ;;  %v358_v23 = vld [vmem:[%s2781_s6 + $0x458] sm:$0xff]  ;;  %v389_v1 = vld [vmem:[%s2781_s6 + $0x550] sm:$0xff] }
  0xb5   : > { %1608 = vmatpush1.bf16.msra.mxu0 %v2416_v28  ;;  %v467_v28 = vpack.c.bf16 %v339_v15, %v331_v14  ;;  %v224_v14 = vld [vmem:[%s2781_s6 + $0x28] sm:$0xff] }
  0xb6   : > { %1761 = vmatpush1.bf16.msra.mxu1 %v2419_v29  ;;  %1609 = vmatprep.subr.bf16.mxu0 %v2424_v30  ;;  %v469_v29 = vpack.c.bf16 %v341_v17, %v333_v16  ;;  %v476_v30 = vpack.c.bf16 %v356_v21, %v348_v20  ;;  %v232_v15 = vld [vmem:[%s2781_s6 + $0x68] sm:$0xff]  ;;  %v226_v16 = vld [vmem:[%s2781_s6 + $0x38] sm:$0xff] }
  0xb7   : > { %1762 = vmatprep.subr.bf16.mxu1 %v2427_v31  ;;  %1360 = vmatmul.mubr.bf16.gmra.mxu0 %v443_v32  ;;  %v478_v31 = vpack.c.bf16 %v358_v23, %v350_v22  ;;  %v2458_v32 = vld [vmem:[#allocation5 + $0x290] ss:$8 sps:$4 sm:$0xff]   ;;  %v416_v20 = vpack.c.bf16 %v232_v15, %v224_v14  ;;  %v223_v22 = vld [vmem:[%s2781_s6 + $0x20] sm:$0xff] }
  0xb8   : > { %1513 = vmatmul.mubr.bf16.gmra.mxu1 %v445_v33  ;;  %1369 = vmatprep.mubr.bf16.mxu0 %v452_v34  ;;  %v2461_v33 = vld [vmem:[#allocation5 + $0x390] ss:$8 sps:$4 sm:$0xff]   ;;  %v347_v34 = vld [vmem:[%s2781_s6 + $0x400] sm:$0xff] }
  0xb9   : > { %1522 = vmatprep.mubr.bf16.mxu1 %v454_v35  ;;  %1610 = vmatpush2.bf16.msra.mxu0 %v2422_v36  ;;  %v2466_v35 = vld [vmem:[#allocation5 + $0x284] ss:$8 sps:$4 sm:$0xff]   ;;  %v234_v17 = vld [vmem:[%s2781_s6 + $0x78] sm:$0xff] }
  0xba   : > { %1763 = vmatpush2.bf16.msra.mxu1 %v2425_v37  ;;  %1611 = vmatprep.subr.bf16.mxu0 %v2430_v41  ;;  %v2469_v36 = vld [vmem:[#allocation5 + $0x384] ss:$8 sps:$4 sm:$0xff]   ;;  %v418_v21 = vpack.c.bf16 %v234_v17, %v226_v16 }
  0xbb   : > { %1764 = vmatprep.subr.bf16.mxu1 %v2433_v42  ;;  %v355_v37 = vld [vmem:[%s2781_s6 + $0x440] sm:$0xff]  ;;  %v372_v41 = vld [vmem:[%s2781_s6 + $0x4c8] sm:$0xff]  ;;  %v366_v42 = vld [vmem:[%s2781_s6 + $0x498] sm:$0xff] }
  0xbc   : > { %v475_v46 = vpack.c.bf16 %v355_v37, %v347_v34  ;;  %v231_v23 = vld [vmem:[%s2781_s6 + $0x60] sm:$0xff]  ;;  %v249_v37 = vld [vmem:[%s2781_s6 + $0xf0] sm:$0xff] }
  0xbd   : > { %1612 = vmatpush2.bf16.msra.mxu0 %v2428_v48  ;;  %v484_v48 = vpack.c.bf16 %v372_v41, %v364_v40  ;;  %v239_v34 = vld [vmem:[%s2781_s6 + $0xa0] sm:$0xff]  ;;  %v258_v40 = vld [vmem:[%s2781_s6 + $0x138] sm:$0xff] }
  0xbe   : > { %1765 = vmatpush2.bf16.msra.mxu1 %v2431_v49  ;;  %1613 = vmatprep.subr.bf16.mxu0 %v2436_v50  ;;  %v486_v49 = vpack.c.bf16 %v374_v43, %v366_v42  ;;  %v363_v50 = vld [vmem:[%s2781_s6 + $0x480] sm:$0xff]  ;;  %v266_v41 = vld [vmem:[%s2781_s6 + $0x178] sm:$0xff] }
  0xbf   : > { %1766 = vmatprep.subr.bf16.mxu1 %v2439_v51  ;;  %1370 = vmatmul.mubr.bf16.gmra.mxu0 %v451_v52  ;;  %v371_v51 = vld [vmem:[%s2781_s6 + $0x4c0] sm:$0xff]  ;;  %v365_v52 = vld [vmem:[%s2781_s6 + $0x490] sm:$0xff] }
  0xc0   : > { %1523 = vmatmul.mubr.bf16.gmra.mxu1 %v453_v53  ;;  %1379 = vmatprep.mubr.bf16.mxu0 %v460_v54  ;;  %v373_v53 = vld [vmem:[%s2781_s6 + $0x4d0] sm:$0xff]  ;;  %v380_v54 = vld [vmem:[%s2781_s6 + $0x508] sm:$0xff]  ;;  %v483_v58 = vpack.c.bf16 %v371_v51, %v363_v50 }
  0xc1   : > { %1532 = vmatprep.mubr.bf16.mxu1 %v462_v55  ;;  %1614 = vmatpush2.bf16.msra.mxu0 %v2434_v56  ;;  %v388_v55 = vld [vmem:[%s2781_s6 + $0x548] sm:$0xff]  ;;  %v382_v56 = vld [vmem:[%s2781_s6 + $0x518] sm:$0xff]  ;;  %v485_v59 = vpack.c.bf16 %v373_v53, %v365_v52 }
  0xc2   : > { %1767 = vmatpush2.bf16.msra.mxu1 %v2437_v57  ;;  %1615 = vmatprep.subr.bf16.mxu0 %v2442_v62  ;;  %v390_v57 = vld [vmem:[%s2781_s6 + $0x558] sm:$0xff]  ;;  %v492_v60 = vpack.c.bf16 %v388_v55, %v380_v54  ;;  %v379_v62 = vld [vmem:[%s2781_s6 + $0x500] sm:$0xff]  ;;  %v272_v50 = vld [vmem:[%s2781_s6 + $0x1a8] sm:$0xff] }
  0xc3   : > { %1768 = vmatprep.subr.bf16.mxu1 %v2445_v63  ;;  %v494_v61 = vpack.c.bf16 %v390_v57, %v382_v56  ;;  %v387_v63 = vld [vmem:[%s2781_s6 + $0x540] sm:$0xff]  ;;  %v280_v51 = vld [vmem:[%s2781_s6 + $0x1e8] sm:$0xff]  ;;  %v274_v52 = vld [vmem:[%s2781_s6 + $0x1b8] sm:$0xff] }
  0xc4   : > { %v282_v53 = vld [vmem:[%s2781_s6 + $0x1f8] sm:$0xff]  ;;  %v440_v56 = vpack.c.bf16 %v280_v51, %v272_v50 }
  0xc5   : > { %1616 = vmatpush2.bf16.msra.mxu0 %v2440_v4  ;;  %v398_v4 = vld [vmem:[%s2781_s6 + $0x598] sm:$0xff]  ;;  %v442_v57 = vpack.c.bf16 %v282_v53, %v274_v52 }
  0xc6   : > { %1769 = vmatpush2.bf16.msra.mxu1 %v2443_v5  ;;  %1617 = vmatprep.subr.bf16.mxu0 %v2448_v6  ;;  %v406_v5 = vld [vmem:[%s2781_s6 + $0x5d8] sm:$0xff]  ;;  %v491_v6 = vpack.c.bf16 %v387_v63, %v379_v62  ;;  %v288_v62 = vld [vmem:[%s2781_s6 + $0x228] sm:$0xff] }
  0xc7   : > { %1770 = vmatprep.subr.bf16.mxu1 %v2451_v7  ;;  %1380 = vmatmul.mubr.bf16.gmra.mxu0 %v459_v8  ;;  %v493_v7 = vpack.c.bf16 %v389_v1, %v381_v0  ;;  %v500_v8 = vpack.c.bf16 %v404_v3, %v396_v2  ;;  %v296_v63 = vld [vmem:[%s2781_s6 + $0x268] sm:$0xff]  ;;  %v290_v0 = vld [vmem:[%s2781_s6 + $0x238] sm:$0xff] }
  0xc8   : > { %1533 = vmatmul.mubr.bf16.gmra.mxu1 %v461_v9  ;;  %1389 = vmatprep.mubr.bf16.mxu0 %v468_v10  ;;  %v502_v9 = vpack.c.bf16 %v406_v5, %v398_v4  ;;  %v395_v10 = vld [vmem:[%s2781_s6 + $0x580] sm:$0xff]  ;;  %v298_v1 = vld [vmem:[%s2781_s6 + $0x278] sm:$0xff]  ;;  %v448_v4 = vpack.c.bf16 %v296_v63, %v288_v62 }
  0xc9   : > { %1542 = vmatprep.mubr.bf16.mxu1 %v470_v11  ;;  %1618 = vmatpush2.bf16.msra.mxu0 %v2446_v12  ;;  %v403_v11 = vld [vmem:[%s2781_s6 + $0x5c0] sm:$0xff]  ;;  %v397_v12 = vld [vmem:[%s2781_s6 + $0x590] sm:$0xff]  ;;  %v450_v5 = vpack.c.bf16 %v298_v1, %v290_v0 }
  0xca   : > { %1771 = vmatpush2.bf16.msra.mxu1 %v2449_v13  ;;  %1619 = vmatprep.subr.bf16.mxu0 %v2454_v18  ;;  %v405_v13 = vld [vmem:[%s2781_s6 + $0x5d0] sm:$0xff]  ;;  %v499_v18 = vpack.c.bf16 %v403_v11, %v395_v10  ;;  %v304_v10 = vld [vmem:[%s2781_s6 + $0x2a8] sm:$0xff] }
  0xcb   : > { %1772 = vmatprep.subr.bf16.mxu1 %v2457_v19  ;;  %v501_v19 = vpack.c.bf16 %v405_v13, %v397_v12  ;;  %v312_v11 = vld [vmem:[%s2781_s6 + $0x2e8] sm:$0xff]  ;;  %v306_v12 = vld [vmem:[%s2781_s6 + $0x2b8] sm:$0xff] }
  0xcc   : > { %v314_v13 = vld [vmem:[%s2781_s6 + $0x2f8] sm:$0xff]  ;;  %v456_v16 = vpack.c.bf16 %v312_v11, %v304_v10 }
  0xcd   : > { %1620 = vmatpush2.bf16.msra.mxu0 %v2452_v24  ;;  %v225_v24 = vld [vmem:[%s2781_s6 + $0x30] sm:$0xff]  ;;  %v458_v17 = vpack.c.bf16 %v314_v13, %v306_v12 }
  0xce   : > { %1773 = vmatpush2.bf16.msra.mxu1 %v2455_v25  ;;  %1621 = vmatprep.subr.bf16.mxu0 %v2460_v26  ;;  %v233_v25 = vld [vmem:[%s2781_s6 + $0x70] sm:$0xff]  ;;  %v240_v26 = vld [vmem:[%s2781_s6 + $0xa8] sm:$0xff] }
  0xcf   : > { %1774 = vmatprep.subr.bf16.mxu1 %v2463_v27  ;;  %1390 = vmatmul.mubr.bf16.gmra.mxu0 %v467_v28  ;;  %v248_v27 = vld [vmem:[%s2781_s6 + $0xe8] sm:$0xff]  ;;  %v242_v28 = vld [vmem:[%s2781_s6 + $0xb8] sm:$0xff] }
  0xd0   : > { %1543 = vmatmul.mubr.bf16.gmra.mxu1 %v469_v29  ;;  %1399 = vmatprep.mubr.bf16.mxu0 %v476_v30  ;;  %v250_v29 = vld [vmem:[%s2781_s6 + $0xf8] sm:$0xff]  ;;  %v415_v30 = vpack.c.bf16 %v231_v23, %v223_v22  ;;  %v320_v22 = vld [vmem:[%s2781_s6 + $0x328] sm:$0xff] }
  0xd1   : > { %1552 = vmatprep.mubr.bf16.mxu1 %v478_v31  ;;  %1622 = vmatpush2.bf16.msra.mxu0 %v2458_v32  ;;  %v417_v31 = vpack.c.bf16 %v233_v25, %v225_v24  ;;  %v424_v32 = vpack.c.bf16 %v248_v27, %v240_v26  ;;  %v328_v23 = vld [vmem:[%s2781_s6 + $0x368] sm:$0xff]  ;;  %v322_v24 = vld [vmem:[%s2781_s6 + $0x338] sm:$0xff] }
  0xd2   : > { %1775 = vmatpush2.bf16.msra.mxu1 %v2461_v33  ;;  %1623 = vmatprep.subr.bf16.mxu0 %v2466_v35  ;;  %v426_v33 = vpack.c.bf16 %v250_v29, %v242_v28  ;;  %v247_v35 = vld [vmem:[%s2781_s6 + $0xe0] sm:$0xff]  ;;  %v330_v25 = vld [vmem:[%s2781_s6 + $0x378] sm:$0xff]  ;;  %v464_v28 = vpack.c.bf16 %v328_v23, %v320_v22 }
  0xd3   : > { %1776 = vmatprep.subr.bf16.mxu1 %v2469_v36  ;;  %v241_v36 = vld [vmem:[%s2781_s6 + $0xb0] sm:$0xff]  ;;  %v423_v42 = vpack.c.bf16 %v247_v35, %v239_v34  ;;  %v466_v29 = vpack.c.bf16 %v330_v25, %v322_v24  ;;  %v336_v34 = vld [vmem:[%s2781_s6 + $0x3a8] sm:$0xff] }
  0xd4   : > { %v425_v43 = vpack.c.bf16 %v249_v37, %v241_v36  ;;  %v344_v35 = vld [vmem:[%s2781_s6 + $0x3e8] sm:$0xff]  ;;  %v338_v36 = vld [vmem:[%s2781_s6 + $0x3b8] sm:$0xff] }
  0xd5   : > { %1624 = vmatpush2.bf16.msra.mxu0 %v2464_v44  ;;  %v432_v44 = vpack.c.bf16 %v264_v39, %v256_v38  ;;  %v346_v37 = vld [vmem:[%s2781_s6 + $0x3f8] sm:$0xff] }
  0xd6   : > { %1777 = vmatpush2.bf16.msra.mxu1 %v2467_v45  ;;  %v434_v45 = vpack.c.bf16 %v266_v41, %v258_v40  ;;  %v472_v40 = vpack.c.bf16 %v344_v35, %v336_v34  ;;  %v474_v41 = vpack.c.bf16 %v346_v37, %v338_v36  ;;  %v635_v35 = vld [vmem:[#allocation7] sm:$0x3] }
  0xd7   : > { %1400 = vmatmul.mubr.bf16.gmra.mxu0 %v475_v46  ;;  %v255_v46 = vld [vmem:[%s2781_s6 + $0x120] sm:$0xff] }
  0xd8   : > { %1553 = vmatmul.mubr.bf16.gmra.mxu1 %v477_v47  ;;  %1409 = vmatprep.mubr.bf16.mxu0 %v484_v48  ;;  %v263_v47 = vld [vmem:[%s2781_s6 + $0x160] sm:$0xff]  ;;  %v257_v48 = vld [vmem:[%s2781_s6 + $0x130] sm:$0xff] }
  0xd9   : > { %1562 = vmatprep.mubr.bf16.mxu1 %v486_v49  ;;  %v265_v49 = vld [vmem:[%s2781_s6 + $0x170] sm:$0xff]  ;;  %v431_v54 = vpack.c.bf16 %v263_v47, %v255_v46  ;;  %v352_v46 = vld [vmem:[%s2781_s6 + $0x428] sm:$0xff] }
  0xda   : > { %v433_v55 = vpack.c.bf16 %v265_v49, %v257_v48  ;;  %v360_v47 = vld [vmem:[%s2781_s6 + $0x468] sm:$0xff]  ;;  %v354_v48 = vld [vmem:[%s2781_s6 + $0x438] sm:$0xff] }
  0xdb   : > { %v362_v49 = vld [vmem:[%s2781_s6 + $0x478] sm:$0xff]  ;;  %v480_v52 = vpack.c.bf16 %v360_v47, %v352_v46 }
  0xdc   : > { %v482_v53 = vpack.c.bf16 %v362_v49, %v354_v48 }
  0xdf   : > { %1410 = vmatmul.mubr.bf16.gmra.mxu0 %v483_v58  ;;  %v271_v58 = vld [vmem:[%s2781_s6 + $0x1a0] sm:$0xff] }
  0xe0   : > { %1563 = vmatmul.mubr.bf16.gmra.mxu1 %v485_v59  ;;  %1419 = vmatprep.mubr.bf16.mxu0 %v492_v60  ;;  %v279_v59 = vld [vmem:[%s2781_s6 + $0x1e0] sm:$0xff]  ;;  %v273_v60 = vld [vmem:[%s2781_s6 + $0x1b0] sm:$0xff] }
  0xe1   : > { %1572 = vmatprep.mubr.bf16.mxu1 %v494_v61  ;;  %v281_v61 = vld [vmem:[%s2781_s6 + $0x1f0] sm:$0xff]  ;;  %v439_v2 = vpack.c.bf16 %v279_v59, %v271_v58  ;;  %v368_v58 = vld [vmem:[%s2781_s6 + $0x4a8] sm:$0xff] }
  0xe2   : > { %v441_v3 = vpack.c.bf16 %v281_v61, %v273_v60  ;;  %v376_v59 = vld [vmem:[%s2781_s6 + $0x4e8] sm:$0xff]  ;;  %v370_v60 = vld [vmem:[%s2781_s6 + $0x4b8] sm:$0xff] }
  0xe3   : > { %v378_v61 = vld [vmem:[%s2781_s6 + $0x4f8] sm:$0xff]  ;;  %v488_v0 = vpack.c.bf16 %v376_v59, %v368_v58 }
  0xe4   : > { %v490_v1 = vpack.c.bf16 %v378_v61, %v370_v60 }
  0xe7   : > { %1420 = vmatmul.mubr.bf16.gmra.mxu0 %v491_v6  ;;  %v287_v6 = vld [vmem:[%s2781_s6 + $0x220] sm:$0xff] }
  0xe8   : > { %1573 = vmatmul.mubr.bf16.gmra.mxu1 %v493_v7  ;;  %1429 = vmatprep.mubr.bf16.mxu0 %v500_v8  ;;  %v295_v7 = vld [vmem:[%s2781_s6 + $0x260] sm:$0xff]  ;;  %v289_v8 = vld [vmem:[%s2781_s6 + $0x230] sm:$0xff] }
  0xe9   : > { %1582 = vmatprep.mubr.bf16.mxu1 %v502_v9  ;;  %v297_v9 = vld [vmem:[%s2781_s6 + $0x270] sm:$0xff]  ;;  %v447_v14 = vpack.c.bf16 %v295_v7, %v287_v6  ;;  %v384_v6 = vld [vmem:[%s2781_s6 + $0x528] sm:$0xff] }
  0xea   : > { %v449_v15 = vpack.c.bf16 %v297_v9, %v289_v8  ;;  %v392_v7 = vld [vmem:[%s2781_s6 + $0x568] sm:$0xff]  ;;  %v386_v8 = vld [vmem:[%s2781_s6 + $0x538] sm:$0xff] }
  0xeb   : > { %v394_v9 = vld [vmem:[%s2781_s6 + $0x578] sm:$0xff]  ;;  %v496_v12 = vpack.c.bf16 %v392_v7, %v384_v6 }
  0xec   : > { %v498_v13 = vpack.c.bf16 %v394_v9, %v386_v8 }
  0xef   : > { %1430 = vmatmul.mubr.bf16.gmra.mxu0 %v499_v18  ;;  %v303_v18 = vld [vmem:[%s2781_s6 + $0x2a0] sm:$0xff] }
  0xf0   : > { %1583 = vmatmul.mubr.bf16.gmra.mxu1 %v501_v19  ;;  %1625 = vmatprep.mubr.bf16.mxu0 %v416_v20  ;;  %v311_v19 = vld [vmem:[%s2781_s6 + $0x2e0] sm:$0xff]  ;;  %v305_v20 = vld [vmem:[%s2781_s6 + $0x2b0] sm:$0xff] }
  0xf1   : > { %1778 = vmatprep.mubr.bf16.mxu1 %v418_v21  ;;  %v313_v21 = vld [vmem:[%s2781_s6 + $0x2f0] sm:$0xff]  ;;  %v455_v26 = vpack.c.bf16 %v311_v19, %v303_v18  ;;  %v400_v18 = vld [vmem:[%s2781_s6 + $0x5a8] sm:$0xff] }
  0xf2   : > { %v457_v27 = vpack.c.bf16 %v313_v21, %v305_v20  ;;  %v408_v19 = vld [vmem:[%s2781_s6 + $0x5e8] sm:$0xff]  ;;  %v402_v20 = vld [vmem:[%s2781_s6 + $0x5b8] sm:$0xff] }
  0xf3   : > { %v410_v21 = vld [vmem:[%s2781_s6 + $0x5f8] sm:$0xff]  ;;  %v504_v24 = vpack.c.bf16 %v408_v19, %v400_v18 }
  0xf4   : > { %v506_v25 = vpack.c.bf16 %v410_v21, %v402_v20 }
  0xf7   : > { %1626 = vmatmul.mubr.bf16.vlgmr.msra.gmra.mxu0 %v415_v30  ;;  %v319_v30 = vld [vmem:[%s2781_s6 + $0x320] sm:$0xff] }
  0xf8   : > { %1779 = vmatmul.mubr.bf16.vlgmr.msra.gmra.mxu1 %v417_v31  ;;  %1635 = vmatprep.mubr.bf16.mxu0 %v424_v32  ;;  %v327_v31 = vld [vmem:[%s2781_s6 + $0x360] sm:$0xff]  ;;  %v321_v32 = vld [vmem:[%s2781_s6 + $0x330] sm:$0xff] }
  0xf9   : > { %1788 = vmatprep.mubr.bf16.mxu1 %v426_v33  ;;  %v329_v33 = vld [vmem:[%s2781_s6 + $0x370] sm:$0xff]  ;;  %v463_v38 = vpack.c.bf16 %v327_v31, %v319_v30  ;;  %v637_v30 = vlaneseq }
  0xfa   : > { %v465_v39 = vpack.c.bf16 %v329_v33, %v321_v32 }
  0xfb   : > { %v638_v33 = vshrl.u32 %v637_v30, 7 }
  0xfd   : > { %v639_v34 = vsub.s32 0, %v638_v33  ;;  %v643_v36 = vsub.s32 1, %v638_v33 }
  0xff   : > { %1636 = vmatmul.mubr.bf16.gmra.mxu0 %v423_v42  ;;  %v335_v42 = vld [vmem:[%s2781_s6 + $0x3a0] sm:$0xff]  ;;  %v2983_v37 = vrot.slane %v635_v35, %v639_v34 }
 0x100   : > { %1789 = vmatmul.mubr.bf16.gmra.mxu1 %v425_v43  ;;  %1645 = vmatprep.mubr.bf16.mxu0 %v432_v44  ;;  %v343_v43 = vld [vmem:[%s2781_s6 + $0x3e0] sm:$0xff]  ;;  %v337_v44 = vld [vmem:[%s2781_s6 + $0x3b0] sm:$0xff] }
 0x101   : > { %1798 = vmatprep.mubr.bf16.mxu1 %v434_v45  ;;  %v345_v45 = vld [vmem:[%s2781_s6 + $0x3f0] sm:$0xff]  ;;  %v471_v50 = vpack.c.bf16 %v343_v43, %v335_v42 }
 0x102   : > { %v473_v51 = vpack.c.bf16 %v345_v45, %v337_v44 }
 0x107   : > { %1646 = vmatmul.mubr.bf16.gmra.mxu0 %v431_v54  ;;  %v351_v54 = vld [vmem:[%s2781_s6 + $0x420] sm:$0xff] }
 0x108   : > { %1799 = vmatmul.mubr.bf16.gmra.mxu1 %v433_v55  ;;  %1655 = vmatprep.mubr.bf16.mxu0 %v440_v56  ;;  %v359_v55 = vld [vmem:[%s2781_s6 + $0x460] sm:$0xff]  ;;  %v353_v56 = vld [vmem:[%s2781_s6 + $0x430] sm:$0xff] }
 0x109   : > { %1808 = vmatprep.mubr.bf16.mxu1 %v442_v57  ;;  %v361_v57 = vld [vmem:[%s2781_s6 + $0x470] sm:$0xff]  ;;  %v479_v62 = vpack.c.bf16 %v359_v55, %v351_v54 }
 0x10a   : > { %v481_v63 = vpack.c.bf16 %v361_v57, %v353_v56 }
 0x10f   : > { %1656 = vmatmul.mubr.bf16.gmra.mxu0 %v439_v2  ;;  %v367_v2 = vld [vmem:[%s2781_s6 + $0x4a0] sm:$0xff] }
 0x110   : > { %1809 = vmatmul.mubr.bf16.gmra.mxu1 %v441_v3  ;;  %1665 = vmatprep.mubr.bf16.mxu0 %v448_v4  ;;  %v375_v3 = vld [vmem:[%s2781_s6 + $0x4e0] sm:$0xff]  ;;  %v369_v4 = vld [vmem:[%s2781_s6 + $0x4b0] sm:$0xff] }
 0x111   : > { %1818 = vmatprep.mubr.bf16.mxu1 %v450_v5  ;;  %v377_v5 = vld [vmem:[%s2781_s6 + $0x4f0] sm:$0xff]  ;;  %v487_v10 = vpack.c.bf16 %v375_v3, %v367_v2 }
 0x112   : > { %v489_v11 = vpack.c.bf16 %v377_v5, %v369_v4 }
 0x117   : > { %1666 = vmatmul.mubr.bf16.gmra.mxu0 %v447_v14  ;;  %v383_v14 = vld [vmem:[%s2781_s6 + $0x520] sm:$0xff] }
 0x118   : > { %1819 = vmatmul.mubr.bf16.gmra.mxu1 %v449_v15  ;;  %1675 = vmatprep.mubr.bf16.mxu0 %v456_v16  ;;  %v391_v15 = vld [vmem:[%s2781_s6 + $0x560] sm:$0xff]  ;;  %v385_v16 = vld [vmem:[%s2781_s6 + $0x530] sm:$0xff] }
 0x119   : > { %1828 = vmatprep.mubr.bf16.mxu1 %v458_v17  ;;  %v393_v17 = vld [vmem:[%s2781_s6 + $0x570] sm:$0xff]  ;;  %v495_v22 = vpack.c.bf16 %v391_v15, %v383_v14 }
 0x11a   : > { %v497_v23 = vpack.c.bf16 %v393_v17, %v385_v16 }
 0x11f   : > { %1676 = vmatmul.mubr.bf16.gmra.mxu0 %v455_v26  ;;  %v399_v26 = vld [vmem:[%s2781_s6 + $0x5a0] sm:$0xff] }
 0x120   : > { %1829 = vmatmul.mubr.bf16.gmra.mxu1 %v457_v27  ;;  %1685 = vmatprep.mubr.bf16.mxu0 %v464_v28  ;;  %v407_v27 = vld [vmem:[%s2781_s6 + $0x5e0] sm:$0xff]  ;;  %v401_v28 = vld [vmem:[%s2781_s6 + $0x5b0] sm:$0xff] }
 0x121   : > { %1838 = vmatprep.mubr.bf16.mxu1 %v466_v29  ;;  %v409_v29 = vld [vmem:[%s2781_s6 + $0x5f0] sm:$0xff]  ;;  %v503_v31 = vpack.c.bf16 %v407_v27, %v399_v26 }
 0x122   : > { %v505_v32 = vpack.c.bf16 %v409_v29, %v401_v28 }
 0x127   : > { %1686 = vmatmul.mubr.bf16.gmra.mxu0 %v463_v38  ;;  %v2985_v38 = vrot.slane %v635_v35, %v643_v36 }
 0x128   : > { %1839 = vmatmul.mubr.bf16.gmra.mxu1 %v465_v39  ;;  %1695 = vmatprep.mubr.bf16.mxu0 %v472_v40 }
 0x129   : > { %1848 = vmatprep.mubr.bf16.mxu1 %v474_v41 }
 0x12f   : > { %1696 = vmatmul.mubr.bf16.gmra.mxu0 %v471_v50 }
 0x130   : > { %1849 = vmatmul.mubr.bf16.gmra.mxu1 %v473_v51  ;;  %1705 = vmatprep.mubr.bf16.mxu0 %v480_v52 }
 0x131   : > { %1858 = vmatprep.mubr.bf16.mxu1 %v482_v53 }
 0x137   : > { %1706 = vmatmul.mubr.bf16.gmra.mxu0 %v479_v62 }
 0x138   : > { %1859 = vmatmul.mubr.bf16.gmra.mxu1 %v481_v63  ;;  %1715 = vmatprep.mubr.bf16.mxu0 %v488_v0 }
 0x139   : > { %1868 = vmatprep.mubr.bf16.mxu1 %v490_v1 }
 0x13f   : > { %1716 = vmatmul.mubr.bf16.gmra.mxu0 %v487_v10 }
 0x140   : > { %1869 = vmatmul.mubr.bf16.gmra.mxu1 %v489_v11  ;;  %1725 = vmatprep.mubr.bf16.mxu0 %v496_v12 }
 0x141   : > { %1878 = vmatprep.mubr.bf16.mxu1 %v498_v13 }
 0x147   : > { %1726 = vmatmul.mubr.bf16.gmra.mxu0 %v495_v22 }
 0x148   : > { %1879 = vmatmul.mubr.bf16.gmra.mxu1 %v497_v23  ;;  %1735 = vmatprep.mubr.bf16.mxu0 %v504_v24 }
 0x149   : > { %1888 = vmatprep.mubr.bf16.mxu1 %v506_v25 }
 0x14f   : > { %1736 = vmatmul.mubr.bf16.gmra.mxu0 %v503_v31 }
 0x150   : > { %1889 = vmatmul.mubr.bf16.gmra.mxu1 %v505_v32 }
 0x157   : > { %v1321_v39 = vpop.f32.mrf.mxu0 }
 0x158   : > { %v1474_v40 = vpop.f32.mrf.mxu1  ;;  %v1322_v41 = vadd.f32 %v1321_v39, %v2983_v37 }
 0x159   : > { %v1323_v42 = vpop.f32.mrf.mxu0 }
 0x15a   : > { %v1476_v43 = vpop.f32.mrf.mxu1  ;;  %v2988_v44 = vadd.f32 %v1474_v40, %v1322_v41  ;;  %v1324_v45 = vadd.f32 %v1323_v42, %v2985_v38 }
 0x15b   : > { %v1325_v46 = vpop.f32.mrf.mxu0 }
 0x15c   : > { %v1478_v47 = vpop.f32.mrf.mxu1  ;;  %v2991_v48 = vadd.f32 %v1476_v43, %v1324_v45  ;;  %v1326_v49 = vadd.f32 %v1325_v46, %v2983_v37 }
 0x15d   : > { %v1327_v50 = vpop.f32.mrf.mxu0 }
 0x15e   : > { %v1480_v51 = vpop.f32.mrf.mxu1  ;;  %v2994_v52 = vadd.f32 %v1478_v47, %v1326_v49  ;;  %v1328_v53 = vadd.f32 %v1327_v50, %v2985_v38 }
 0x15f   : > { %v1331_v54 = vpop.f32.mrf.mxu0 }
 0x160   : > { %v1484_v55 = vpop.f32.mrf.mxu1  ;;  %v2997_v56 = vadd.f32 %v1480_v51, %v1328_v53  ;;  %v1332_v57 = vadd.f32 %v1331_v54, %v2983_v37 }
 0x161   : > { %v1333_v58 = vpop.f32.mrf.mxu0 }
 0x162   : > { %v1486_v59 = vpop.f32.mrf.mxu1  ;;  %v3000_v60 = vadd.f32 %v1484_v55, %v1332_v57  ;;  %v1334_v61 = vadd.f32 %v1333_v58, %v2985_v38 }
 0x163   : > { %v1335_v62 = vpop.f32.mrf.mxu0 }
 0x164   : > { %v1488_v63 = vpop.f32.mrf.mxu1  ;;  %v3003_v0 = vadd.f32 %v1486_v59, %v1334_v61  ;;  %v1336_v1 = vadd.f32 %v1335_v62, %v2983_v37 }
 0x165   : > { %v1337_v2 = vpop.f32.mrf.mxu0 }
 0x166   : > { %v1490_v3 = vpop.f32.mrf.mxu1  ;;  %v3006_v4 = vadd.f32 %v1488_v63, %v1336_v1  ;;  %v1338_v5 = vadd.f32 %v1337_v2, %v2985_v38 }
 0x167   : > { %v1341_v6 = vpop.f32.mrf.mxu0 }
 0x168   : > { %v1494_v7 = vpop.f32.mrf.mxu1  ;;  %v3009_v8 = vadd.f32 %v1490_v3, %v1338_v5  ;;  %v1342_v9 = vadd.f32 %v1341_v6, %v2983_v37 }
 0x169   : > { %v1343_v10 = vpop.f32.mrf.mxu0 }
 0x16a   : > { %v1496_v11 = vpop.f32.mrf.mxu1  ;;  %v3012_v12 = vadd.f32 %v1494_v7, %v1342_v9  ;;  %v1344_v13 = vadd.f32 %v1343_v10, %v2985_v38 }
 0x16b   : > { %v1345_v14 = vpop.f32.mrf.mxu0 }
 0x16c   : > { %v1498_v15 = vpop.f32.mrf.mxu1  ;;  %v3015_v16 = vadd.f32 %v1496_v11, %v1344_v13  ;;  %v1346_v17 = vadd.f32 %v1345_v14, %v2983_v37 }
 0x16d   : > { %v1347_v18 = vpop.f32.mrf.mxu0 }
 0x16e   : > { %v1500_v19 = vpop.f32.mrf.mxu1  ;;  %v3018_v20 = vadd.f32 %v1498_v15, %v1346_v17  ;;  %v1348_v21 = vadd.f32 %v1347_v18, %v2985_v38 }
 0x16f   : > { %v1351_v22 = vpop.f32.mrf.mxu0 }
 0x170   : > { %v1504_v23 = vpop.f32.mrf.mxu1  ;;  %v3021_v24 = vadd.f32 %v1500_v19, %v1348_v21  ;;  %v1352_v25 = vadd.f32 %v1351_v22, %v2983_v37 }
 0x171   : > { %v1353_v26 = vpop.f32.mrf.mxu0 }
 0x172   : > { %v1506_v27 = vpop.f32.mrf.mxu1  ;;  %v3024_v28 = vadd.f32 %v1504_v23, %v1352_v25  ;;  %v1354_v29 = vadd.f32 %v1353_v26, %v2985_v38 }
 0x173   : > { %v1355_v30 = vpop.f32.mrf.mxu0 }
 0x174   : > { %v1508_v31 = vpop.f32.mrf.mxu1  ;;  %v3027_v32 = vadd.f32 %v1506_v27, %v1354_v29  ;;  %v1356_v33 = vadd.f32 %v1355_v30, %v2983_v37 }
 0x175   : > { %v1357_v34 = vpop.f32.mrf.mxu0 }
 0x176   : > { %v1510_v35 = vpop.f32.mrf.mxu1  ;;  %v3030_v36 = vadd.f32 %v1508_v31, %v1356_v33  ;;  %v1358_v39 = vadd.f32 %v1357_v34, %v2985_v38 }
 0x177   : > { %v1361_v40 = vpop.f32.mrf.mxu0 }
 0x178   : > { %v1514_v41 = vpop.f32.mrf.mxu1  ;;  %v3033_v42 = vadd.f32 %v1510_v35, %v1358_v39  ;;  %v1362_v43 = vadd.f32 %v1361_v40, %v2983_v37 }
 0x179   : > { %v1363_v45 = vpop.f32.mrf.mxu0 }
 0x17a   : > { %v1516_v46 = vpop.f32.mrf.mxu1  ;;  %v3036_v47 = vadd.f32 %v1514_v41, %v1362_v43  ;;  %v1364_v49 = vadd.f32 %v1363_v45, %v2985_v38 }
 0x17b   : > { %v1365_v50 = vpop.f32.mrf.mxu0 }
 0x17c   : > { %v1518_v51 = vpop.f32.mrf.mxu1  ;;  %v3039_v53 = vadd.f32 %v1516_v46, %v1364_v49  ;;  %v1366_v54 = vadd.f32 %v1365_v50, %v2983_v37 }
 0x17d   : > { %v1367_v55 = vpop.f32.mrf.mxu0 }
 0x17e   : > { %v1520_v57 = vpop.f32.mrf.mxu1  ;;  %v3042_v58 = vadd.f32 %v1518_v51, %v1366_v54  ;;  %v1368_v59 = vadd.f32 %v1367_v55, %v2985_v38 }
 0x17f   : > { %v1371_v61 = vpop.f32.mrf.mxu0 }
 0x180   : > { %v1524_v62 = vpop.f32.mrf.mxu1  ;;  %v3045_v63 = vadd.f32 %v1520_v57, %v1368_v59  ;;  %v1372_v1 = vadd.f32 %v1371_v61, %v2983_v37 }
 0x181   : > { %v1373_v2 = vpop.f32.mrf.mxu0 }
 0x182   : > { %v1526_v3 = vpop.f32.mrf.mxu1  ;;  %v3048_v5 = vadd.f32 %v1524_v62, %v1372_v1  ;;  %v1374_v6 = vadd.f32 %v1373_v2, %v2985_v38 }
 0x183   : > { %v1375_v7 = vpop.f32.mrf.mxu0 }
 0x184   : > { %v1528_v9 = vpop.f32.mrf.mxu1  ;;  %v3051_v10 = vadd.f32 %v1526_v3, %v1374_v6  ;;  %v1376_v11 = vadd.f32 %v1375_v7, %v2983_v37 }
 0x185   : > { %v1377_v13 = vpop.f32.mrf.mxu0 }
 0x186   : > { %v1530_v14 = vpop.f32.mrf.mxu1  ;;  %v3054_v15 = vadd.f32 %v1528_v9, %v1376_v11  ;;  %v1378_v17 = vadd.f32 %v1377_v13, %v2985_v38 }
 0x187   : > { %v1381_v18 = vpop.f32.mrf.mxu0 }
 0x188   : > { %v1534_v19 = vpop.f32.mrf.mxu1  ;;  %v3057_v21 = vadd.f32 %v1530_v14, %v1378_v17  ;;  %v1382_v22 = vadd.f32 %v1381_v18, %v2983_v37 }
 0x189   : > { %v1383_v23 = vpop.f32.mrf.mxu0 }
 0x18a   : > { %v1536_v25 = vpop.f32.mrf.mxu1  ;;  %v3060_v26 = vadd.f32 %v1534_v19, %v1382_v22  ;;  %v1384_v27 = vadd.f32 %v1383_v23, %v2985_v38 }
 0x18b   : > { %v1385_v29 = vpop.f32.mrf.mxu0 }
 0x18c   : > { %v1538_v30 = vpop.f32.mrf.mxu1  ;;  %v3063_v31 = vadd.f32 %v1536_v25, %v1384_v27  ;;  %v1386_v33 = vadd.f32 %v1385_v29, %v2983_v37 }
 0x18d   : > { %v1387_v34 = vpop.f32.mrf.mxu0 }
 0x18e   : > { %v1540_v35 = vpop.f32.mrf.mxu1  ;;  %v3066_v39 = vadd.f32 %v1538_v30, %v1386_v33  ;;  %v1388_v40 = vadd.f32 %v1387_v34, %v2985_v38 }
 0x18f   : > { %v1391_v41 = vpop.f32.mrf.mxu0 }
 0x190   : > { %v1544_v43 = vpop.f32.mrf.mxu1  ;;  %v3069_v45 = vadd.f32 %v1540_v35, %v1388_v40  ;;  %v1392_v46 = vadd.f32 %v1391_v41, %v2983_v37 }
 0x191   : > { %v1393_v49 = vpop.f32.mrf.mxu0 }
 0x192   : > { %v1546_v50 = vpop.f32.mrf.mxu1  ;;  %v3072_v51 = vadd.f32 %v1544_v43, %v1392_v46  ;;  %v1394_v54 = vadd.f32 %v1393_v49, %v2985_v38 }
 0x193   : > { %v1395_v55 = vpop.f32.mrf.mxu0 }
 0x194   : > { %v1548_v57 = vpop.f32.mrf.mxu1  ;;  %v3075_v59 = vadd.f32 %v1546_v50, %v1394_v54  ;;  %v1396_v61 = vadd.f32 %v1395_v55, %v2983_v37 }
 0x195   : > { %v1397_v62 = vpop.f32.mrf.mxu0 }
 0x196   : > { %v1550_v1 = vpop.f32.mrf.mxu1  ;;  %v3078_v2 = vadd.f32 %v1548_v57, %v1396_v61  ;;  %v1398_v3 = vadd.f32 %v1397_v62, %v2985_v38 }
 0x197   : > { %v1401_v6 = vpop.f32.mrf.mxu0 }
 0x198   : > { %v1554_v7 = vpop.f32.mrf.mxu1  ;;  %v3081_v9 = vadd.f32 %v1550_v1, %v1398_v3  ;;  %v1402_v11 = vadd.f32 %v1401_v6, %v2983_v37 }
 0x199   : > { %v1403_v13 = vpop.f32.mrf.mxu0 }
 0x19a   : > { %v1556_v14 = vpop.f32.mrf.mxu1  ;;  %v3084_v17 = vadd.f32 %v1554_v7, %v1402_v11  ;;  %v1404_v18 = vadd.f32 %v1403_v13, %v2985_v38 }
 0x19b   : > { %v1405_v19 = vpop.f32.mrf.mxu0 }
 0x19c   : > { %v1558_v22 = vpop.f32.mrf.mxu1  ;;  %v3087_v23 = vadd.f32 %v1556_v14, %v1404_v18  ;;  %v1406_v25 = vadd.f32 %v1405_v19, %v2983_v37 }
 0x19d   : > { %v1407_v27 = vpop.f32.mrf.mxu0 }
 0x19e   : > { %v1560_v29 = vpop.f32.mrf.mxu1  ;;  %v3090_v30 = vadd.f32 %v1558_v22, %v1406_v25  ;;  %v1408_v33 = vadd.f32 %v1407_v27, %v2985_v38 }
 0x19f   : > { %v1411_v34 = vpop.f32.mrf.mxu0 }
 0x1a0   : > { %v1564_v35 = vpop.f32.mrf.mxu1  ;;  %v3093_v40 = vadd.f32 %v1560_v29, %v1408_v33  ;;  %v1412_v41 = vadd.f32 %v1411_v34, %v2983_v37 }
 0x1a1   : > { %v1413_v43 = vpop.f32.mrf.mxu0 }
 0x1a2   : > { %v1566_v46 = vpop.f32.mrf.mxu1  ;;  %v3096_v49 = vadd.f32 %v1564_v35, %v1412_v41  ;;  %v1414_v50 = vadd.f32 %v1413_v43, %v2985_v38 }
 0x1a3   : > { %v1415_v54 = vpop.f32.mrf.mxu0 }
 0x1a4   : > { %v1568_v55 = vpop.f32.mrf.mxu1  ;;  %v3099_v57 = vadd.f32 %v1566_v46, %v1414_v50  ;;  %v1416_v61 = vadd.f32 %v1415_v54, %v2983_v37 }
 0x1a5   : > { %v1417_v62 = vpop.f32.mrf.mxu0 }
 0x1a6   : > { %v1570_v1 = vpop.f32.mrf.mxu1  ;;  %v3102_v3 = vadd.f32 %v1568_v55, %v1416_v61  ;;  %v1418_v6 = vadd.f32 %v1417_v62, %v2985_v38 }
 0x1a7   : > { %v1421_v7 = vpop.f32.mrf.mxu0 }
 0x1a8   : > { %v1574_v11 = vpop.f32.mrf.mxu1  ;;  %v3105_v13 = vadd.f32 %v1570_v1, %v1418_v6  ;;  %v1422_v14 = vadd.f32 %v1421_v7, %v2983_v37 }
 0x1a9   : > { %v1423_v18 = vpop.f32.mrf.mxu0 }
 0x1aa   : > { %v1576_v19 = vpop.f32.mrf.mxu1  ;;  %v3108_v22 = vadd.f32 %v1574_v11, %v1422_v14  ;;  %v1424_v25 = vadd.f32 %v1423_v18, %v2985_v38 }
 0x1ab   : > { %v1425_v27 = vpop.f32.mrf.mxu0 }
 0x1ac   : > { %v1578_v29 = vpop.f32.mrf.mxu1  ;;  %v3111_v33 = vadd.f32 %v1576_v19, %v1424_v25  ;;  %v1426_v34 = vadd.f32 %v1425_v27, %v2983_v37 }
 0x1ad   : > { %v1427_v35 = vpop.f32.mrf.mxu0 }
 0x1ae   : > { %v1580_v41 = vpop.f32.mrf.mxu1  ;;  %v3114_v43 = vadd.f32 %v1578_v29, %v1426_v34  ;;  %v1428_v46 = vadd.f32 %v1427_v35, %v2985_v38 }
 0x1af   : > { %v1431_v50 = vpop.f32.mrf.mxu0 }
 0x1b0   : > { %v1584_v54 = vpop.f32.mrf.mxu1  ;;  %v3117_v55 = vadd.f32 %v1580_v41, %v1428_v46  ;;  %v1432_v61 = vadd.f32 %v1431_v50, %v2983_v37 }
 0x1b1   : > { %v1433_v62 = vpop.f32.mrf.mxu0 }
 0x1b2   : > { %v1586_v1 = vpop.f32.mrf.mxu1  ;;  %v3120_v6 = vadd.f32 %v1584_v54, %v1432_v61  ;;  %v1434_v7 = vadd.f32 %v1433_v62, %v2985_v38 }
 0x1b3   : > { %v1435_v11 = vpop.f32.mrf.mxu0 }
 0x1b4   : > { %v1588_v14 = vpop.f32.mrf.mxu1  ;;  %v3123_v18 = vadd.f32 %v1586_v1, %v1434_v7  ;;  %v1436_v19 = vadd.f32 %v1435_v11, %v2983_v37 }
 0x1b5   : > { %v1437_v25 = vpop.f32.mrf.mxu0 }
 0x1b6   : > { %v1590_v27 = vpop.f32.mrf.mxu1  ;;  %v3127_v29 = vadd.f32 %v1588_v14, %v1436_v19  ;;  %v1438_v34 = vadd.f32 %v1437_v25, %v2985_v38 }
 0x1b7   : > { %v1627_v35 = vpop.f32.mrf.mxu0 }
 0x1b8   : > { %v1780_v41 = vpop.f32.mrf.mxu1  ;;  %v3130_v46 = vadd.f32 %v1590_v27, %v1438_v34  ;;  %v1628_v50 = vadd.f32 %v1627_v35, %v2988_v44 }
 0x1b9   : > { %v1629_v54 = vpop.f32.mrf.mxu0 }
 0x1ba   : > { %v1782_v61 = vpop.f32.mrf.mxu1  ;;  %v1781_v62 = vadd.f32 %v1780_v41, %v1628_v50  ;;  %v1630_v1 = vadd.f32 %v1629_v54, %v2991_v48 }
 0x1bb   : > { %v1631_v7 = vpop.f32.mrf.mxu0 }
 0x1bc   : > { %v1784_v37 = vpop.f32.mrf.mxu1  ;;  %1899 = vst [vmem:[%s3134_s20] sm:$0xff] %v1781_v62  ;;  %v1783_v38 = vadd.f32 %v1782_v61, %v1630_v1  ;;  %v1632_v11 = vadd.f32 %v1631_v7, %v2994_v52 }
 0x1bd   : > { %v1633_v14 = vpop.f32.mrf.mxu0 }
 0x1be   : > { %v1786_v19 = vpop.f32.mrf.mxu1  ;;  %1900 = vst [vmem:[%s3134_s20 + $0x8] sm:$0xff] %v1783_v38  ;;  %v1785_v44 = vadd.f32 %v1784_v37, %v1632_v11  ;;  %v1634_v25 = vadd.f32 %v1633_v14, %v2997_v56 }
 0x1bf   : > { %v1637_v48 = vpop.f32.mrf.mxu0 }
 0x1c0   : > { %v1790_v27 = vpop.f32.mrf.mxu1  ;;  %1901 = vst [vmem:[%s3134_s20 + $0x10] sm:$0xff] %v1785_v44  ;;  %v1787_v34 = vadd.f32 %v1786_v19, %v1634_v25  ;;  %v1638_v35 = vadd.f32 %v1637_v48, %v3000_v60 }
 0x1c1   : > { %v1639_v41 = vpop.f32.mrf.mxu0 }
 0x1c2   : > { %v1792_v50 = vpop.f32.mrf.mxu1  ;;  %1902 = vst [vmem:[%s3134_s20 + $0x18] sm:$0xff] %v1787_v34  ;;  %v1791_v54 = vadd.f32 %v1790_v27, %v1638_v35  ;;  %v1640_v52 = vadd.f32 %v1639_v41, %v3003_v0 }
 0x1c3   : > { %v1641_v61 = vpop.f32.mrf.mxu0 }
 0x1c4   : > { %v1794_v62 = vpop.f32.mrf.mxu1  ;;  %1903 = vst [vmem:[%s3134_s20 + $0x20] sm:$0xff] %v1791_v54  ;;  %v1793_v1 = vadd.f32 %v1792_v50, %v1640_v52  ;;  %v1642_v56 = vadd.f32 %v1641_v61, %v3006_v4 }
 0x1c5   : > { %v1643_v7 = vpop.f32.mrf.mxu0 }
 0x1c6   : > { %v1796_v37 = vpop.f32.mrf.mxu1  ;;  %1904 = vst [vmem:[%s3134_s20 + $0x28] sm:$0xff] %v1793_v1  ;;  %v1795_v38 = vadd.f32 %v1794_v62, %v1642_v56  ;;  %v1644_v60 = vadd.f32 %v1643_v7, %v3009_v8 }
 0x1c7   : > { %v1647_v11 = vpop.f32.mrf.mxu0 }
 0x1c8   : > { %v1800_v14 = vpop.f32.mrf.mxu1  ;;  %1905 = vst [vmem:[%s3134_s20 + $0x30] sm:$0xff] %v1795_v38  ;;  %v1797_v19 = vadd.f32 %v1796_v37, %v1644_v60  ;;  %v1648_v0 = vadd.f32 %v1647_v11, %v3012_v12 }
 0x1c9   : > { %v1649_v44 = vpop.f32.mrf.mxu0 }
 0x1ca   : > { %v1802_v25 = vpop.f32.mrf.mxu1  ;;  %1906 = vst [vmem:[%s3134_s20 + $0x38] sm:$0xff] %v1797_v19  ;;  %v1801_v48 = vadd.f32 %v1800_v14, %v1648_v0  ;;  %v1650_v4 = vadd.f32 %v1649_v44, %v3015_v16 }
 0x1cb   : > { %v1651_v27 = vpop.f32.mrf.mxu0 }
 0x1cc   : > { %v1804_v34 = vpop.f32.mrf.mxu1  ;;  %1907 = vst [vmem:[%s3134_s20 + $0x40] sm:$0xff] %v1801_v48  ;;  %v1803_v35 = vadd.f32 %v1802_v25, %v1650_v4  ;;  %v1652_v8 = vadd.f32 %v1651_v27, %v3018_v20 }
 0x1cd   : > { %v1653_v41 = vpop.f32.mrf.mxu0 }
 0x1ce   : > { %v1806_v50 = vpop.f32.mrf.mxu1  ;;  %1908 = vst [vmem:[%s3134_s20 + $0x48] sm:$0xff] %v1803_v35  ;;  %v1805_v54 = vadd.f32 %v1804_v34, %v1652_v8  ;;  %v1654_v12 = vadd.f32 %v1653_v41, %v3021_v24 }
 0x1cf   : > { %v1657_v52 = vpop.f32.mrf.mxu0 }
 0x1d0   : > { %v1810_v61 = vpop.f32.mrf.mxu1  ;;  %1909 = vst [vmem:[%s3134_s20 + $0x50] sm:$0xff] %v1805_v54  ;;  %v1807_v62 = vadd.f32 %v1806_v50, %v1654_v12  ;;  %v1658_v16 = vadd.f32 %v1657_v52, %v3024_v28 }
 0x1d1   : > { %v1659_v1 = vpop.f32.mrf.mxu0 }
 0x1d2   : > { %v1812_v56 = vpop.f32.mrf.mxu1  ;;  %1910 = vst [vmem:[%s3134_s20 + $0x58] sm:$0xff] %v1807_v62  ;;  %v1811_v7 = vadd.f32 %v1810_v61, %v1658_v16  ;;  %v1660_v20 = vadd.f32 %v1659_v1, %v3027_v32 }
 0x1d3   : > { %v1661_v37 = vpop.f32.mrf.mxu0 }
 0x1d4   : > { %v1814_v38 = vpop.f32.mrf.mxu1  ;;  %1911 = vst [vmem:[%s3134_s20 + $0x60] sm:$0xff] %v1811_v7  ;;  %v1813_v60 = vadd.f32 %v1812_v56, %v1660_v20  ;;  %v1662_v24 = vadd.f32 %v1661_v37, %v3030_v36 }
 0x1d5   : > { %v1663_v11 = vpop.f32.mrf.mxu0 }
 0x1d6   : > { %v1816_v14 = vpop.f32.mrf.mxu1  ;;  %1912 = vst [vmem:[%s3134_s20 + $0x68] sm:$0xff] %v1813_v60  ;;  %v1815_v19 = vadd.f32 %v1814_v38, %v1662_v24  ;;  %v1664_v28 = vadd.f32 %v1663_v11, %v3033_v42 }
 0x1d7   : > { %v1667_v0 = vpop.f32.mrf.mxu0 }
 0x1d8   : > { %v1820_v44 = vpop.f32.mrf.mxu1  ;;  %1913 = vst [vmem:[%s3134_s20 + $0x70] sm:$0xff] %v1815_v19  ;;  %v1817_v25 = vadd.f32 %v1816_v14, %v1664_v28  ;;  %v1668_v32 = vadd.f32 %v1667_v0, %v3036_v47 }
 0x1d9   : > { %v1669_v48 = vpop.f32.mrf.mxu0 }
 0x1da   : > { %v1822_v4 = vpop.f32.mrf.mxu1  ;;  %1914 = vst [vmem:[%s3134_s20 + $0x78] sm:$0xff] %v1817_v25  ;;  %v1821_v27 = vadd.f32 %v1820_v44, %v1668_v32  ;;  %v1670_v36 = vadd.f32 %v1669_v48, %v3039_v53 }
 0x1db   : > { %v1671_v34 = vpop.f32.mrf.mxu0 }
 0x1dc   : > { %v1824_v35 = vpop.f32.mrf.mxu1  ;;  %1915 = vst [vmem:[%s3134_s20 + $0x80] sm:$0xff] %v1821_v27  ;;  %v1823_v8 = vadd.f32 %v1822_v4, %v1670_v36  ;;  %v1672_v42 = vadd.f32 %v1671_v34, %v3042_v58 }
 0x1dd   : > { %v1673_v41 = vpop.f32.mrf.mxu0 }
 0x1de   : > { %v1826_v50 = vpop.f32.mrf.mxu1  ;;  %1916 = vst [vmem:[%s3134_s20 + $0x88] sm:$0xff] %v1823_v8  ;;  %v1825_v54 = vadd.f32 %v1824_v35, %v1672_v42  ;;  %v1674_v47 = vadd.f32 %v1673_v41, %v3045_v63 }
 0x1df   : > { %v1677_v12 = vpop.f32.mrf.mxu0 }
 0x1e0   : > { %v1830_v52 = vpop.f32.mrf.mxu1  ;;  %1917 = vst [vmem:[%s3134_s20 + $0x90] sm:$0xff] %v1825_v54  ;;  %v1827_v61 = vadd.f32 %v1826_v50, %v1674_v47  ;;  %v1678_v53 = vadd.f32 %v1677_v12, %v3048_v5 }
 0x1e1   : > { %v1679_v62 = vpop.f32.mrf.mxu0 }
 0x1e2   : > { %v1832_v16 = vpop.f32.mrf.mxu1  ;;  %1918 = vst [vmem:[%s3134_s20 + $0x98] sm:$0xff] %v1827_v61  ;;  %v1831_v1 = vadd.f32 %v1830_v52, %v1678_v53  ;;  %v1680_v58 = vadd.f32 %v1679_v62, %v3051_v10 }
 0x1e3   : > { %v1681_v56 = vpop.f32.mrf.mxu0 }
 0x1e4   : > { %v1834_v7 = vpop.f32.mrf.mxu1  ;;  %1919 = vst [vmem:[%s3134_s20 + $0xa0] sm:$0xff] %v1831_v1  ;;  %v1833_v20 = vadd.f32 %v1832_v16, %v1680_v58  ;;  %v1682_v63 = vadd.f32 %v1681_v56, %v3054_v15 }
 0x1e5   : > { %v1683_v37 = vpop.f32.mrf.mxu0 }
 0x1e6   : > { %v1836_v38 = vpop.f32.mrf.mxu1  ;;  %1920 = vst [vmem:[%s3134_s20 + $0xa8] sm:$0xff] %v1833_v20  ;;  %v1835_v60 = vadd.f32 %v1834_v7, %v1682_v63  ;;  %v1684_v5 = vadd.f32 %v1683_v37, %v3057_v21 }
 0x1e7   : > { %v1687_v24 = vpop.f32.mrf.mxu0 }
 0x1e8   : > { %v1840_v11 = vpop.f32.mrf.mxu1  ;;  %1921 = vst [vmem:[%s3134_s20 + $0xb0] sm:$0xff] %v1835_v60  ;;  %v1837_v14 = vadd.f32 %v1836_v38, %v1684_v5  ;;  %v1688_v10 = vadd.f32 %v1687_v24, %v3060_v26 }
 0x1e9   : > { %v1689_v19 = vpop.f32.mrf.mxu0 }
 0x1ea   : > { %v1842_v28 = vpop.f32.mrf.mxu1  ;;  %1922 = vst [vmem:[%s3134_s20 + $0xb8] sm:$0xff] %v1837_v14  ;;  %v1841_v0 = vadd.f32 %v1840_v11, %v1688_v10  ;;  %v1690_v15 = vadd.f32 %v1689_v19, %v3063_v31 }
 0x1eb   : > { %v1691_v44 = vpop.f32.mrf.mxu0 }
 0x1ec   : > { %v1844_v25 = vpop.f32.mrf.mxu1  ;;  %1923 = vst [vmem:[%s3134_s20 + $0xc0] sm:$0xff] %v1841_v0  ;;  %v1843_v32 = vadd.f32 %v1842_v28, %v1690_v15  ;;  %v1692_v21 = vadd.f32 %v1691_v44, %v3066_v39 }
 0x1ed   : > { %v1693_v48 = vpop.f32.mrf.mxu0 }
 0x1ee   : > { %v1846_v4 = vpop.f32.mrf.mxu1  ;;  %1924 = vst [vmem:[%s3134_s20 + $0xc8] sm:$0xff] %v1843_v32  ;;  %v1845_v27 = vadd.f32 %v1844_v25, %v1692_v21  ;;  %v1694_v26 = vadd.f32 %v1693_v48, %v3069_v45 }
 0x1ef   : > { %v1697_v36 = vpop.f32.mrf.mxu0 }
 0x1f0   : > { %v1850_v34 = vpop.f32.mrf.mxu1  ;;  %1925 = vst [vmem:[%s3134_s20 + $0xd0] sm:$0xff] %v1845_v27  ;;  %v1847_v35 = vadd.f32 %v1846_v4, %v1694_v26  ;;  %v1698_v31 = vadd.f32 %v1697_v36, %v3072_v51 }
 0x1f1   : > { %v1699_v8 = vpop.f32.mrf.mxu0 }
 0x1f2   : > { %v1852_v42 = vpop.f32.mrf.mxu1  ;;  %1926 = vst [vmem:[%s3134_s20 + $0xd8] sm:$0xff] %v1847_v35  ;;  %v1851_v41 = vadd.f32 %v1850_v34, %v1698_v31  ;;  %v1700_v39 = vadd.f32 %v1699_v8, %v3075_v59 }
 0x1f3   : > { %v1701_v50 = vpop.f32.mrf.mxu0 }
 0x1f4   : > { %v1854_v54 = vpop.f32.mrf.mxu1  ;;  %1927 = vst [vmem:[%s3134_s20 + $0xe0] sm:$0xff] %v1851_v41  ;;  %v1853_v47 = vadd.f32 %v1852_v42, %v1700_v39  ;;  %v1702_v45 = vadd.f32 %v1701_v50, %v3078_v2 }
 0x1f5   : > { %v1703_v12 = vpop.f32.mrf.mxu0 }
 0x1f6   : > { %v1856_v52 = vpop.f32.mrf.mxu1  ;;  %1928 = vst [vmem:[%s3134_s20 + $0xe8] sm:$0xff] %v1853_v47  ;;  %v1855_v61 = vadd.f32 %v1854_v54, %v1702_v45  ;;  %v1704_v51 = vadd.f32 %v1703_v12, %v3081_v9 }
 0x1f7   : > { %v1707_v53 = vpop.f32.mrf.mxu0 }
 0x1f8   : > { %v1860_v62 = vpop.f32.mrf.mxu1  ;;  %1929 = vst [vmem:[%s3134_s20 + $0xf0] sm:$0xff] %v1855_v61  ;;  %v1857_v16 = vadd.f32 %v1856_v52, %v1704_v51  ;;  %v1708_v59 = vadd.f32 %v1707_v53, %v3084_v17 }
 0x1f9   : > { %v1709_v1 = vpop.f32.mrf.mxu0 }
 0x1fa   : > { %v1862_v58 = vpop.f32.mrf.mxu1  ;;  %1930 = vst [vmem:[%s3134_s20 + $0xf8] sm:$0xff] %v1857_v16  ;;  %v1861_v56 = vadd.f32 %v1860_v62, %v1708_v59  ;;  %v1710_v2 = vadd.f32 %v1709_v1, %v3087_v23 }
 0x1fb   : > { %v1711_v7 = vpop.f32.mrf.mxu0 }
 0x1fc   : > { %v1864_v20 = vpop.f32.mrf.mxu1  ;;  %1931 = vst [vmem:[%s3134_s20 + $0x100] sm:$0xff] %v1861_v56  ;;  %v1863_v63 = vadd.f32 %v1862_v58, %v1710_v2  ;;  %v1712_v9 = vadd.f32 %v1711_v7, %v3090_v30 }
 0x1fd   : > { %v1713_v37 = vpop.f32.mrf.mxu0 }
 0x1fe   : > { %v1866_v38 = vpop.f32.mrf.mxu1  ;;  %1932 = vst [vmem:[%s3134_s20 + $0x108] sm:$0xff] %v1863_v63  ;;  %v1865_v60 = vadd.f32 %v1864_v20, %v1712_v9  ;;  %v1714_v17 = vadd.f32 %v1713_v37, %v3093_v40 }
 0x1ff   : > { %v1717_v5 = vpop.f32.mrf.mxu0 }
 0x200   : > { %v1870_v24 = vpop.f32.mrf.mxu1  ;;  %1933 = vst [vmem:[%s3134_s20 + $0x110] sm:$0xff] %v1865_v60  ;;  %v1867_v11 = vadd.f32 %v1866_v38, %v1714_v17  ;;  %v1718_v23 = vadd.f32 %v1717_v5, %v3096_v49 }
 0x201   : > { %v1719_v14 = vpop.f32.mrf.mxu0 }
 0x202   : > { %v1872_v10 = vpop.f32.mrf.mxu1  ;;  %1934 = vst [vmem:[%s3134_s20 + $0x118] sm:$0xff] %v1867_v11  ;;  %v1871_v19 = vadd.f32 %v1870_v24, %v1718_v23  ;;  %v1720_v30 = vadd.f32 %v1719_v14, %v3099_v57 }
 0x203   : > { %v1721_v28 = vpop.f32.mrf.mxu0 }
 0x204   : > { %v1874_v0 = vpop.f32.mrf.mxu1  ;;  %1935 = vst [vmem:[%s3134_s20 + $0x120] sm:$0xff] %v1871_v19  ;;  %v1873_v15 = vadd.f32 %v1872_v10, %v1720_v30  ;;  %v1722_v40 = vadd.f32 %v1721_v28, %v3102_v3 }
 0x205   : > { %v1723_v44 = vpop.f32.mrf.mxu0 }
 0x206   : > { %v1876_v25 = vpop.f32.mrf.mxu1  ;;  %1936 = vst [vmem:[%s3134_s20 + $0x128] sm:$0xff] %v1873_v15  ;;  %v1875_v32 = vadd.f32 %v1874_v0, %v1722_v40  ;;  %v1724_v49 = vadd.f32 %v1723_v44, %v3105_v13 }
 0x207   : > { %v1727_v21 = vpop.f32.mrf.mxu0 }
 0x208   : > { %v1880_v48 = vpop.f32.mrf.mxu1  ;;  %1937 = vst [vmem:[%s3134_s20 + $0x130] sm:$0xff] %v1875_v32  ;;  %v1877_v4 = vadd.f32 %v1876_v25, %v1724_v49  ;;  %v1728_v57 = vadd.f32 %v1727_v21, %v3108_v22 }
 0x209   : > { %v1729_v27 = vpop.f32.mrf.mxu0 }
 0x20a   : > { %v1882_v26 = vpop.f32.mrf.mxu1  ;;  %1938 = vst [vmem:[%s3134_s20 + $0x138] sm:$0xff] %v1877_v4  ;;  %v1881_v36 = vadd.f32 %v1880_v48, %v1728_v57  ;;  %v1730_v3 = vadd.f32 %v1729_v27, %v3111_v33 }
 0x20b   : > { %v1731_v34 = vpop.f32.mrf.mxu0 }
 0x20c   : > { %v1884_v35 = vpop.f32.mrf.mxu1  ;;  %1939 = vst [vmem:[%s3134_s20 + $0x140] sm:$0xff] %v1881_v36  ;;  %v1883_v31 = vadd.f32 %v1882_v26, %v1730_v3  ;;  %v1732_v13 = vadd.f32 %v1731_v34, %v3114_v43 }
 0x20d   : > { %v1733_v8 = vpop.f32.mrf.mxu0 }
 0x20e   : > { %v1886_v42 = vpop.f32.mrf.mxu1  ;;  %1940 = vst [vmem:[%s3134_s20 + $0x148] sm:$0xff] %v1883_v31  ;;  %v1885_v22 = vadd.f32 %v1884_v35, %v1732_v13  ;;  %v1734_v41 = vadd.f32 %v1733_v8, %v3117_v55 }
 0x20f   : > { %v1737_v39 = vpop.f32.mrf.mxu0 }
 0x210   : > { %v1890_v50 = vpop.f32.mrf.mxu1  ;;  %1941 = vst [vmem:[%s3134_s20 + $0x150] sm:$0xff] %v1885_v22  ;;  %v1887_v33 = vadd.f32 %v1886_v42, %v1734_v41  ;;  %v1738_v54 = vadd.f32 %v1737_v39, %v3120_v6 }
 0x211   : > { %v1739_v47 = vpop.f32.mrf.mxu0 }
 0x212   : > { %v1892_v45 = vpop.f32.mrf.mxu1  ;;  %1942 = vst [vmem:[%s3134_s20 + $0x158] sm:$0xff] %v1887_v33  ;;  %v1891_v43 = vadd.f32 %v1890_v50, %v1738_v54  ;;  %v1740_v12 = vadd.f32 %v1739_v47, %v3123_v18 }
 0x213   : > { %v1741_v52 = vpop.f32.mrf.mxu0 }
 0x214   : > { %v1894_v61 = vpop.f32.mrf.mxu1  ;;  %1943 = vst [vmem:[%s3134_s20 + $0x160] sm:$0xff] %v1891_v43  ;;  %v1893_v55 = vadd.f32 %v1892_v45, %v1740_v12  ;;  %v1742_v51 = vadd.f32 %v1741_v52, %v3127_v29 }
 0x215   : > { %v1743_v53 = vpop.f32.mrf.mxu0 }
 0x216   : > { %1944 = vst [vmem:[%s3134_s20 + $0x168] sm:$0xff] %v1893_v55  ;;  %v1895_v6 = vadd.f32 %v1894_v61, %v1742_v51  ;;  %v1744_v62 = vadd.f32 %v1743_v53, %v3130_v46  ;;  %v1896_v16 = vpop.f32.mrf.mxu1 }
 0x218   : > { %1945 = vst [vmem:[%s3134_s20 + $0x170] sm:$0xff] %v1895_v6  ;;  %v1897_v18 = vadd.f32 %v1896_v16, %v1744_v62 }
 0x21a   : > { %1946 = vst [vmem:[%s3134_s20 + $0x178] sm:$0xff] %v1897_v18 }
 0x21b   : > { %2563 = shalt.err (!%p2560_p9)
}
 0x21c   : > { %s2564_s24 = scalar_lea.hbm %s3233_s8, 6144  ;;  %s2568_s4 = scalar_lea.hbm %s3283_s3, 12288 }
 0x21d   : > { %p2565_p13 = scmp.ne.s32.totalorder %s3233_s8, %s2564_s24  ;;  %p2569_p4 = scmp.lt.s32.totalorder %s3233_s8, %s3283_s3 }
 0x21e   : > { %p2570_p8 = scmp.lt.s32.totalorder %s2568_s4, %s2564_s24 }
 0x21f   : > { %p2566_p5 = pnand %p2565_p13, %p3299_p10 }
 0x220   : > { %p2571_p3 = por %p2570_p8, %p2569_p4 }
 0x221   : > { %p2567_p0 = pneg %p2566_p5 }
 0x223   : > { %p2572_p11 = pnand %p2571_p3, %p2567_p0 }
 0x225   : > { %2575 = shalt.err (!%p2572_p11)
}
 0x226   : > { %s2628_s18 = smov 256   ;;  %s2629_s20 = smov 16  }
 0x227   : > { %2215 = dma.vmem_to_hbm [thread:$0]  (%p3299_p10), %s3235_s26, 6144, %s3233_s8, %s1948_s16, %s2628_s18, %s2628_s18, %s2629_s20  }
 0x228 PF: > { %s1977_s23 = sand.u32 1, %s2606_s12   ;;  %p3300_p1 = scmp.ne.s32.totalorder %s3289_s19, 0 }
 0x229   : > { %p3301_p2 = scmp.ge.s32.totalorder %s2618_s15, 2  ;;  %s1978_s28 = scalar_lea.sflag [#allocation4], %s1977_s23 }
 0x22b   : > { %p2229_p6 = pnand %p3301_p2, %p3300_p1 }
 0x22d   : > { %p2230_p12 = pneg %p2229_p6 }
 0x22f   : > { %2601 = dma.done.wait (%p2230_p12), %s1978_s28, 6144  }
 0x230   : > { %2603 = vsyncadd (%p2230_p12), %s1978_s28, 4294961152  ;;  %p17_p7 = scmp.ge.s32.totalorder %s2722_s7, 4   ;;  %s3302_s12 = smov %s2610_s13 }
 0x231   : > { %s3303_s13 = smov %s2614_s14  ;;  %s3304_s14 = smov %s2738_s11 }
 0x232   : > { %s3305_s15 = smov %s2722_s7  ;;  %19 = sbr.rel (!%p17_p7) target bundleno = 6 (0x6), region = 85 }
 0x237   :  { %1983 = vsyncpa [#allocation3], 1 }
 0x238   :  { %1985 = vsyncpa [#allocation3 + $0x1], 1 }
 0x239   :  { %1986 = vsyncpa [#allocation6], 1 }
 0x23a   :  { %1987 = vsyncpa [#allocation4], 1 }
 0x23b   :  { %1989 = vsyncpa [#allocation4 + $0x1], 1 }

</bundles_post_ra>
